<compile_context>
chip_gen: v6e
topology: v6e:2x2x1
jax: 0.10.0
libtpu: 0.0.40
codegen_flags: <defaults>
</compile_context>

<pallas_src>
import jax
import jax.numpy as jnp
from jax.experimental import pallas as pl
from jax.experimental.pallas import tpu as pltpu

# ----------------------- small, module-consistent config ---------------------
IMAGE_SIZE = 16
IMAGE_CHANNELS = 4
PATCH_SIZE = 8
EMBED_DIM = 32
NUM_HEADS = 4
NUM_LAYERS = 2
NUM_CLASSES = 2
BATCH = 2

NUM_PATCHES = (IMAGE_SIZE // PATCH_SIZE) ** 2            # 4
SEQ = NUM_PATCHES + 1                                     # 5 (cls + patches)
SEQ_PAD = 8                                               # one (8,128) sublane tile / image
ROWS = BATCH * SEQ_PAD                                    # 16 padded token rows
PATCH_DIM = PATCH_SIZE * PATCH_SIZE * IMAGE_CHANNELS      # 256
HEAD_DIM = EMBED_DIM // NUM_HEADS                         # 8
HIDDEN_DIM = EMBED_DIM * 4                                # 128
QKV_PAD = 128                                             # 3*EMBED_DIM = 96 padded to lane tile
LN_EPS = 1e-5
SCALE = HEAD_DIM ** (-0.5)
NEG_INF = -1e30
INV_SQRT2 = 0.7071067811865476

# ---- row offsets inside the packed "aux" (K, EMBED_DIM) parameter array ----
AUX_POS = 0                                # rows 0..15 : pos_full slab
AUX_LN1_G = ROWS                           # 16..17
AUX_LN1_B = AUX_LN1_G + NUM_LAYERS         # 18..19
AUX_LN2_G = AUX_LN1_B + NUM_LAYERS         # 20..21
AUX_LN2_B = AUX_LN2_G + NUM_LAYERS         # 22..23
AUX_WO_B = AUX_LN2_B + NUM_LAYERS          # 24..25
AUX_MLP_B2 = AUX_WO_B + NUM_LAYERS         # 26..27
AUX_FN_G = AUX_MLP_B2 + NUM_LAYERS         # 28
AUX_FN_B = AUX_FN_G + 1                    # 29
AUX_ROWS = AUX_FN_B + 1                    # 30


# ------------------------------- kernel helpers ------------------------------
def _layernorm(x, gamma, beta):
    # Biased variance, eps inside sqrt (torch.nn.LayerNorm defaults).
    mu = jnp.mean(x, axis=-1, keepdims=True)
    var = jnp.mean((x - mu) ** 2, axis=-1, keepdims=True)
    return (x - mu) * jax.lax.rsqrt(var + LN_EPS) * gamma + beta


def _gelu_exact(x):
    # torch.nn.GELU default = exact erf formulation.
    return 0.5 * x * (1.0 + jax.lax.erf(x * INV_SQRT2))


# ------------------------------ fused VIT kernel ------------------------------
def vit_kernel(patches_ref, pe_w_ref, aux_ref, wqkv_ref, wo_ref,
               mlp_w1b1_ref, mlp_w2_ref, cls_wb_ref, out_ref, ctx_scr):
    # ---- patch embedding: one matmul over the whole padded token slab.
    # cls token, positional embeddings, the linear bias and the zero pad rows
    # are all folded into the precomputed pos_full rows (aux rows 0..15).
    x = (jnp.dot(patches_ref[...], pe_w_ref[...],
                 preferred_element_type=jnp.float32)
         + aux_ref[AUX_POS:AUX_POS + ROWS, :])                          # (R, D)

    # Block-diagonal + pad-column additive attention bias.  BATCH == 2, so the
    # image-id test is a single compare; pad key columns (5..7, 13..15) are
    # masked so real tokens never attend to padding.
    row_i = jax.lax.broadcasted_iota(jnp.int32, (ROWS, ROWS), 0)
    col_i = jax.lax.broadcasted_iota(jnp.int32, (ROWS, ROWS), 1)
    same_img = (row_i >= SEQ_PAD) == (col_i >= SEQ_PAD)
    col_real = (col_i < SEQ) | ((col_i >= SEQ_PAD) & (col_i < SEQ_PAD + SEQ))
    neg_bias = jnp.where(same_img & col_real,
                         jnp.float32(0.0), jnp.float32(NEG_INF))        # (R, R)

    # ---- transformer encoder layers (static loop, weights stay in VMEM) ----
    for l in range(NUM_LAYERS):
        # --- pre-norm multi-head attention ---
        g1 = aux_ref[AUX_LN1_G + l:AUX_LN1_G + l + 1, :]
        b1 = aux_ref[AUX_LN1_B + l:AUX_LN1_B + l + 1, :]
        h_ln = _layernorm(x, g1, b1)                                    # (R, D)

        # Fused qkv projection: single (R, D) @ (D, 128) matmul; lanes 0:96
        # hold [q | k | v] in the torch layout, 96:128 are zero padding.
        qkv = jnp.dot(h_ln, wqkv_ref[l], preferred_element_type=jnp.float32)

        for hh in range(NUM_HEADS):
            q0 = hh * HEAD_DIM
            qh = qkv[:, q0:q0 + HEAD_DIM]                               # (R, hd)
            kh = qkv[:, EMBED_DIM + q0:EMBED_DIM + q0 + HEAD_DIM]
            vh = qkv[:, 2 * EMBED_DIM + q0:2 * EMBED_DIM + q0 + HEAD_DIM]

            # scores: contract on the last axes (no explicit transpose of k)
            scores = jax.lax.dot_general(
                qh, kh, (((1,), (1,)), ((), ())),
                preferred_element_type=jnp.float32) * SCALE + neg_bias  # (R, R)

            m = jnp.max(scores, axis=-1, keepdims=True)
            p = jnp.exp(scores - m)
            probs = p / jnp.sum(p, axis=-1, keepdims=True)              # exact
            # fold this head's context into its 8-lane window of the scratch
            ctx_scr[:, q0:q0 + HEAD_DIM] = jnp.dot(
                probs, vh, preferred_element_type=jnp.float32)

        # Fused output projection: ONE (R,32)@(32,32) matmul for all heads.
        wo_b = aux_ref[AUX_WO_B + l:AUX_WO_B + l + 1, :]
        attn = jnp.dot(ctx_scr[...], wo_ref[l],
                       preferred_element_type=jnp.float32) + wo_b
        x = x + attn

        # --- pre-norm MLP ---
        g2 = aux_ref[AUX_LN2_G + l:AUX_LN2_G + l + 1, :]
        b2 = aux_ref[AUX_LN2_B + l:AUX_LN2_B + l + 1, :]
        h = _layernorm(x, g2, b2)

        w1b1 = mlp_w1b1_ref[l]                                          # (D+1, HID)
        h = jnp.dot(h, w1b1[0:EMBED_DIM, :],
                    preferred_element_type=jnp.float32) + w1b1[EMBED_DIM:EMBED_DIM + 1, :]
        h = _gelu_exact(h)
        h = (jnp.dot(h, mlp_w2_ref[l], preferred_element_type=jnp.float32)
             + aux_ref[AUX_MLP_B2 + l:AUX_MLP_B2 + l + 1, :])
        x = x + h

    # ---- final norm + classifier on the whole slab; only cls rows stored ----
    hn = _layernorm(x, aux_ref[AUX_FN_G:AUX_FN_G + 1, :],
                    aux_ref[AUX_FN_B:AUX_FN_B + 1, :])                  # (R, D)
    logits = (jnp.dot(hn, cls_wb_ref[0:EMBED_DIM, :],
                      preferred_element_type=jnp.float32)
              + cls_wb_ref[EMBED_DIM:EMBED_DIM + 1, :])                 # (R, C)
    out_ref[0:1, :] = logits[0:1, :]                    # cls of image 0 (row 0)
    out_ref[1:2, :] = logits[SEQ_PAD:SEQ_PAD + 1, :]    # cls of image 1 (row 8)


# ------------------------------- glue (plain JAX) ----------------------------
def unfold_patches(x):
    # x: (B, C, H, W) NCHW -> (B*SEQ_PAD, C*p*p) with feature order (c, kh, kw),
    # identical to torch.nn.Unfold(kernel_size=p, stride=p).transpose(1, 2).
    # Each image's patch block is padded to SEQ_PAD rows: row 0 is the cls slot
    # (zeros), rows 1..N are the patches, remaining rows are zero padding.
    B, C, H, W = x.shape
    p = PATCH_SIZE
    x = x.reshape(B, C, H // p, p, W // p, p)
    x = x.transpose(0, 2, 4, 1, 3, 5)                       # (B, Hp, Wp, C, p, p)
    x = x.reshape(B, NUM_PATCHES, PATCH_DIM)
    x = jnp.pad(x, ((0, 0), (1, SEQ_PAD - 1 - NUM_PATCHES), (0, 0)))
    return x.reshape(BATCH * SEQ_PAD, PATCH_DIM)            # (ROWS, PATCH_DIM)


def vit_forward(x, params):
    patches = unfold_patches(x)                              # (ROWS, PATCH_DIM)
    vmem = pl.BlockSpec(memory_space=pltpu.MemorySpace.VMEM)
    # Grid-free single invocation: correct call for 1-TC v5e/v6e.  On v7x, a
    # grid=(BATCH,) with dimension_semantics=("parallel",) could split the two
    # images across the two TensorCores.
    return pl.pallas_call(
        vit_kernel,
        out_shape=jax.ShapeDtypeStruct((BATCH, NUM_CLASSES), jnp.float32),
        in_specs=[vmem] * 8,
        out_specs=vmem,
        scratch_shapes=[
            pltpu.VMEM((ROWS, EMBED_DIM), jnp.float32),      # per-layer ctx slab
        ],
    )(patches, params["pe_w"], params["aux"], params["wqkv"], params["wo"],
      params["mlp_w1b1"], params["mlp_w2"], params["cls_wb"])


# ------------------------------ param construction ---------------------------
def init_params(key):
    def nrm(k, shape, scale=0.02):
        return scale * jax.random.normal(k, shape, dtype=jnp.float32)

    keys = iter(jax.random.split(key, 16))
    L, D, HID, C = NUM_LAYERS, EMBED_DIM, HIDDEN_DIM, NUM_CLASSES

    # ---- raw parameters (match the torch module's structure) ----
    pe_w = nrm(next(keys), (PATCH_DIM, D))                  # Linear weight^T
    pe_b = nrm(next(keys), (1, D))
    cls = jax.random.normal(next(keys), (1, D), dtype=jnp.float32)
    pos = jax.random.normal(next(keys), (SEQ, D), dtype=jnp.float32)

    ln1_g = jnp.ones((L, D), jnp.float32)
    ln1_b = jnp.zeros((L, D), jnp.float32)
    ln2_g = jnp.ones((L, D), jnp.float32)
    ln2_b = jnp.zeros((L, D), jnp.float32)
    fn_g = jnp.ones((1, D), jnp.float32)
    fn_b = jnp.zeros((1, D), jnp.float32)

    wqkv = nrm(next(keys), (L, D, 3 * D))    # [q | k | v], head-major within each
    wo = nrm(next(keys), (L, D, D))
    wo_b = nrm(next(keys), (L, D))
    mlp_w1 = nrm(next(keys), (L, D, HID))
    mlp_b1 = nrm(next(keys), (L, 1, HID))
    mlp_w2 = nrm(next(keys), (L, HID, D))
    mlp_b2 = nrm(next(keys), (L, D))
    cls_w = nrm(next(keys), (D, C))
    cls_b = nrm(next(keys), (1, C))

    # ---- pack into the kernel's fused / tile-aligned layout ----
    # pos_full: per-image SEQ_PAD-row slab.
    #   row 0          : cls_token + pos[0]            (cls slot; matmul adds 0)
    #   rows 1..N      : linear bias + pos[1..N]       (matmul adds patch @ W)
    #   rows N+1..7    : zeros                          (pad rows stay zero)
    slab = jnp.concatenate(
        [cls + pos[0:1, :],
         pe_b + pos[1:SEQ, :],
         jnp.zeros((SEQ_PAD - SEQ, D), jnp.float32)], axis=0)      # (SEQ_PAD, D)
    pos_full = jnp.concatenate([slab] * BATCH, axis=0)             # (ROWS, D)

    aux = jnp.concatenate(
        [pos_full, ln1_g, ln1_b, ln2_g, ln2_b, wo_b, mlp_b2, fn_g, fn_b],
        axis=0)                                                    # (AUX_ROWS, D)
    assert aux.shape == (AUX_ROWS, D)

    wqkv_pad = jnp.pad(wqkv, ((0, 0), (0, 0), (0, QKV_PAD - 3 * D)))   # (L, D, 128)
    mlp_w1b1 = jnp.concatenate([mlp_w1, mlp_b1], axis=1)               # (L, D+1, HID)
    cls_wb = jnp.concatenate([cls_w, cls_b], axis=0)                   # (D+1, C)

    return {"pe_w": pe_w, "aux": aux, "wqkv": wqkv_pad, "wo": wo,
            "mlp_w1b1": mlp_w1b1, "mlp_w2": mlp_w2, "cls_wb": cls_wb}


if __name__ == "__main__":
    key = jax.random.PRNGKey(0)
    k_x, k_p = jax.random.split(key)
    x = jax.random.normal(k_x, (BATCH, IMAGE_CHANNELS, IMAGE_SIZE, IMAGE_SIZE),
                          dtype=jnp.float32)
    params = init_params(k_p)

    fwd = jax.jit(vit_forward)
    logits = fwd(x, params)
    jax.block_until_ready(logits)
    assert logits.shape == (BATCH, NUM_CLASSES)
    assert bool(jnp.all(jnp.isfinite(logits)))
    print("KERNEL_OK")
</pallas_src>

<mosaic_0001>
module attributes {stable_mosaic.version = 11 : i64} {
  func.func @vit_kernel(%arg0: memref<16x256xf32, #tpu.memory_space<vmem>>, %arg1: memref<256x32xf32, #tpu.memory_space<vmem>>, %arg2: memref<30x32xf32, #tpu.memory_space<vmem>>, %arg3: memref<2x32x128xf32, #tpu.memory_space<vmem>>, %arg4: memref<2x32x32xf32, #tpu.memory_space<vmem>>, %arg5: memref<2x33x128xf32, #tpu.memory_space<vmem>>, %arg6: memref<2x128x32xf32, #tpu.memory_space<vmem>>, %arg7: memref<33x2xf32, #tpu.memory_space<vmem>>, %arg8: memref<2x2xf32, #tpu.memory_space<vmem>>, %arg9: memref<16x32xf32, #tpu.memory_space<vmem>>) attributes {dimension_semantics = [], scalar_prefetch = 0 : i64, scratch_operands = 1 : i64, tpu.core_type = #tpu.core_type<tc>} {
    %c0 = arith.constant 0 : index
    %c0_0 = arith.constant 0 : index
    %0 = vector.load %arg0[%c0, %c0_0] : memref<16x256xf32, #tpu.memory_space<vmem>>, vector<16x256xf32>
    %c0_1 = arith.constant 0 : index
    %c0_2 = arith.constant 0 : index
    %1 = vector.load %arg1[%c0_1, %c0_2] : memref<256x32xf32, #tpu.memory_space<vmem>>, vector<256x32xf32>
    %cst = arith.constant dense<0.000000e+00> : vector<16x32xf32>
    %2 = tpu.matmul %0, %1, %cst {dimension_numbers = #tpu.dot_dimension_numbers<[1], [0], [0], [1], [0, 0, 1, 1], [], []>} : vector<16x256xf32>, vector<256x32xf32>, vector<16x32xf32> -> vector<16x32xf32>
    %c0_3 = arith.constant 0 : index
    %c0_4 = arith.constant 0 : index
    %3 = vector.load %arg2[%c0_3, %c0_4] : memref<30x32xf32, #tpu.memory_space<vmem>>, vector<16x32xf32>
    %4 = arith.addf %2, %3 : vector<16x32xf32>
    %5 = tpu.iota {dimensions = array<i32: 0>} : vector<16x16xi32>
    %6 = tpu.iota {dimensions = array<i32: 1>} : vector<16x16xi32>
    %c8_i32 = arith.constant 8 : i32
    %7 = vector.broadcast %c8_i32 : i32 to vector<16x16xi32>
    %8 = arith.cmpi sge, %5, %7 : vector<16x16xi32>
    %c8_i32_5 = arith.constant 8 : i32
    %9 = vector.broadcast %c8_i32_5 : i32 to vector<16x16xi32>
    %10 = arith.cmpi sge, %6, %9 : vector<16x16xi32>
    %11 = arith.xori %8, %10 : vector<16x16xi1>
    %cst_6 = arith.constant dense<true> : vector<16x16xi1>
    %12 = arith.xori %11, %cst_6 : vector<16x16xi1>
    %c5_i32 = arith.constant 5 : i32
    %13 = vector.broadcast %c5_i32 : i32 to vector<16x16xi32>
    %14 = arith.cmpi slt, %6, %13 : vector<16x16xi32>
    %c8_i32_7 = arith.constant 8 : i32
    %15 = vector.broadcast %c8_i32_7 : i32 to vector<16x16xi32>
    %16 = arith.cmpi sge, %6, %15 : vector<16x16xi32>
    %c13_i32 = arith.constant 13 : i32
    %17 = vector.broadcast %c13_i32 : i32 to vector<16x16xi32>
    %18 = arith.cmpi slt, %6, %17 : vector<16x16xi32>
    %19 = arith.andi %16, %18 : vector<16x16xi1>
    %20 = arith.ori %14, %19 : vector<16x16xi1>
    %21 = arith.andi %12, %20 : vector<16x16xi1>
    %cst_8 = arith.constant 0.000000e+00 : f32
    %cst_9 = arith.constant -1.000000e+30 : f32
    %22 = vector.broadcast %cst_8 : f32 to vector<16x16xf32>
    %23 = vector.broadcast %cst_9 : f32 to vector<16x16xf32>
    %24 = arith.select %21, %22, %23 : vector<16x16xi1>, vector<16x16xf32>
    %c16 = arith.constant 16 : index
    %c0_10 = arith.constant 0 : index
    %25 = vector.load %arg2[%c16, %c0_10] : memref<30x32xf32, #tpu.memory_space<vmem>>, vector<1x32xf32>
    %c18 = arith.constant 18 : index
    %c0_11 = arith.constant 0 : index
    %26 = vector.load %arg2[%c18, %c0_11] : memref<30x32xf32, #tpu.memory_space<vmem>>, vector<1x32xf32>
    %cst_12 = arith.constant dense<0.000000e+00> : vector<16xf32>
    %27 = vector.multi_reduction <add>, %4, %cst_12 [1] : vector<16x32xf32> to vector<16xf32>
    %28 = vector.shape_cast %27 : vector<16xf32> to vector<16x1xf32>
    %cst_13 = arith.constant 3.200000e+01 : f32
    %29 = vector.broadcast %cst_13 : f32 to vector<16x1xf32>
    %30 = arith.divf %28, %29 : vector<16x1xf32>
    %31 = vector.broadcast %30 : vector<16x1xf32> to vector<16x32xf32>
    %32 = arith.subf %4, %31 : vector<16x32xf32>
    %33 = arith.mulf %32, %32 : vector<16x32xf32>
    %cst_14 = arith.constant dense<0.000000e+00> : vector<16xf32>
    %34 = vector.multi_reduction <add>, %33, %cst_14 [1] : vector<16x32xf32> to vector<16xf32>
    %35 = vector.shape_cast %34 : vector<16xf32> to vector<16x1xf32>
    %cst_15 = arith.constant 3.200000e+01 : f32
    %36 = vector.broadcast %cst_15 : f32 to vector<16x1xf32>
    %37 = arith.divf %35, %36 : vector<16x1xf32>
    %38 = vector.broadcast %30 : vector<16x1xf32> to vector<16x32xf32>
    %39 = arith.subf %4, %38 : vector<16x32xf32>
    %cst_16 = arith.constant 9.99999974E-6 : f32
    %40 = vector.broadcast %cst_16 : f32 to vector<16x1xf32>
    %41 = arith.addf %37, %40 : vector<16x1xf32>
    %42 = math.rsqrt %41 : vector<16x1xf32>
    %43 = vector.broadcast %42 : vector<16x1xf32> to vector<16x32xf32>
    %44 = arith.mulf %39, %43 : vector<16x32xf32>
    %45 = vector.broadcast %25 : vector<1x32xf32> to vector<16x32xf32>
    %46 = arith.mulf %44, %45 : vector<16x32xf32>
    %47 = vector.broadcast %26 : vector<1x32xf32> to vector<16x32xf32>
    %48 = arith.addf %46, %47 : vector<16x32xf32>
    %c0_17 = arith.constant 0 : index
    %c0_18 = arith.constant 0 : index
    %c0_19 = arith.constant 0 : index
    %49 = vector.load %arg3[%c0_17, %c0_18, %c0_19] : memref<2x32x128xf32, #tpu.memory_space<vmem>>, vector<1x32x128xf32>
    %50 = vector.shape_cast %49 : vector<1x32x128xf32> to vector<32x128xf32>
    %cst_20 = arith.constant dense<0.000000e+00> : vector<16x128xf32>
    %51 = tpu.matmul %48, %50, %cst_20 {dimension_numbers = #tpu.dot_dimension_numbers<[1], [0], [0], [1], [0, 0, 1, 1], [], []>} : vector<16x32xf32>, vector<32x128xf32>, vector<16x128xf32> -> vector<16x128xf32>
    %52 = vector.extract_strided_slice %51 {offsets = [0, 0], sizes = [16, 8], strides = [1, 1]} : vector<16x128xf32> to vector<16x8xf32>
    %53 = vector.extract_strided_slice %51 {offsets = [0, 32], sizes = [16, 8], strides = [1, 1]} : vector<16x128xf32> to vector<16x8xf32>
    %54 = vector.extract_strided_slice %51 {offsets = [0, 64], sizes = [16, 8], strides = [1, 1]} : vector<16x128xf32> to vector<16x8xf32>
    %cst_21 = arith.constant dense<0.000000e+00> : vector<16x16xf32>
    %55 = tpu.matmul %52, %53, %cst_21 {dimension_numbers = #tpu.dot_dimension_numbers<[1], [1], [0], [0], [0, 0, 1, 0], [], []>} : vector<16x8xf32>, vector<16x8xf32>, vector<16x16xf32> -> vector<16x16xf32>
    %cst_22 = arith.constant 0.353553385 : f32
    %56 = vector.broadcast %cst_22 : f32 to vector<16x16xf32>
    %57 = arith.mulf %55, %56 : vector<16x16xf32>
    %58 = arith.addf %57, %24 : vector<16x16xf32>
    %cst_23 = arith.constant dense<0xFF800000> : vector<16xf32>
    %59 = vector.multi_reduction <maximumf>, %58, %cst_23 [1] : vector<16x16xf32> to vector<16xf32>
    %60 = vector.shape_cast %59 : vector<16xf32> to vector<16x1xf32>
    %61 = vector.broadcast %60 : vector<16x1xf32> to vector<16x16xf32>
    %62 = arith.subf %58, %61 : vector<16x16xf32>
    %63 = math.exp %62 : vector<16x16xf32>
    %cst_24 = arith.constant dense<0.000000e+00> : vector<16xf32>
    %64 = vector.multi_reduction <add>, %63, %cst_24 [1] : vector<16x16xf32> to vector<16xf32>
    %65 = vector.shape_cast %64 : vector<16xf32> to vector<16x1xf32>
    %66 = vector.broadcast %65 : vector<16x1xf32> to vector<16x16xf32>
    %67 = arith.divf %63, %66 : vector<16x16xf32>
    %cst_25 = arith.constant dense<0.000000e+00> : vector<16x8xf32>
    %68 = tpu.matmul %67, %54, %cst_25 {dimension_numbers = #tpu.dot_dimension_numbers<[1], [0], [0], [1], [0, 0, 1, 1], [], []>} : vector<16x16xf32>, vector<16x8xf32>, vector<16x8xf32> -> vector<16x8xf32>
    %c0_26 = arith.constant 0 : index
    %c0_27 = arith.constant 0 : index
    %69 = vector.load %arg9[%c0_26, %c0_27] : memref<16x32xf32, #tpu.memory_space<vmem>>, vector<16x8xf32>
    tpu.vector_store %arg9[%c0_26, %c0_27], %68 {strides = array<i32>} : memref<16x32xf32, #tpu.memory_space<vmem>>, vector<16x8xf32>,
    %70 = vector.extract_strided_slice %51 {offsets = [0, 8], sizes = [16, 8], strides = [1, 1]} : vector<16x128xf32> to vector<16x8xf32>
    %71 = vector.extract_strided_slice %51 {offsets = [0, 40], sizes = [16, 8], strides = [1, 1]} : vector<16x128xf32> to vector<16x8xf32>
    %72 = vector.extract_strided_slice %51 {offsets = [0, 72], sizes = [16, 8], strides = [1, 1]} : vector<16x128xf32> to vector<16x8xf32>
    %cst_28 = arith.constant dense<0.000000e+00> : vector<16x16xf32>
    %73 = tpu.matmul %70, %71, %cst_28 {dimension_numbers = #tpu.dot_dimension_numbers<[1], [1], [0], [0], [0, 0, 1, 0], [], []>} : vector<16x8xf32>, vector<16x8xf32>, vector<16x16xf32> -> vector<16x16xf32>
    %cst_29 = arith.constant 0.353553385 : f32
    %74 = vector.broadcast %cst_29 : f32 to vector<16x16xf32>
    %75 = arith.mulf %73, %74 : vector<16x16xf32>
    %76 = arith.addf %75, %24 : vector<16x16xf32>
    %cst_30 = arith.constant dense<0xFF800000> : vector<16xf32>
    %77 = vector.multi_reduction <maximumf>, %76, %cst_30 [1] : vector<16x16xf32> to vector<16xf32>
    %78 = vector.shape_cast %77 : vector<16xf32> to vector<16x1xf32>
    %79 = vector.broadcast %78 : vector<16x1xf32> to vector<16x16xf32>
    %80 = arith.subf %76, %79 : vector<16x16xf32>
    %81 = math.exp %80 : vector<16x16xf32>
    %cst_31 = arith.constant dense<0.000000e+00> : vector<16xf32>
    %82 = vector.multi_reduction <add>, %81, %cst_31 [1] : vector<16x16xf32> to vector<16xf32>
    %83 = vector.shape_cast %82 : vector<16xf32> to vector<16x1xf32>
    %84 = vector.broadcast %83 : vector<16x1xf32> to vector<16x16xf32>
    %85 = arith.divf %81, %84 : vector<16x16xf32>
    %cst_32 = arith.constant dense<0.000000e+00> : vector<16x8xf32>
    %86 = tpu.matmul %85, %72, %cst_32 {dimension_numbers = #tpu.dot_dimension_numbers<[1], [0], [0], [1], [0, 0, 1, 1], [], []>} : vector<16x16xf32>, vector<16x8xf32>, vector<16x8xf32> -> vector<16x8xf32>
    %c0_33 = arith.constant 0 : index
    %c8 = arith.constant 8 : index
    %87 = vector.load %arg9[%c0_33, %c8] : memref<16x32xf32, #tpu.memory_space<vmem>>, vector<16x8xf32>
    tpu.vector_store %arg9[%c0_33, %c8], %86 {strides = array<i32>} : memref<16x32xf32, #tpu.memory_space<vmem>>, vector<16x8xf32>,
    %88 = vector.extract_strided_slice %51 {offsets = [0, 16], sizes = [16, 8], strides = [1, 1]} : vector<16x128xf32> to vector<16x8xf32>
    %89 = vector.extract_strided_slice %51 {offsets = [0, 48], sizes = [16, 8], strides = [1, 1]} : vector<16x128xf32> to vector<16x8xf32>
    %90 = vector.extract_strided_slice %51 {offsets = [0, 80], sizes = [16, 8], strides = [1, 1]} : vector<16x128xf32> to vector<16x8xf32>
    %cst_34 = arith.constant dense<0.000000e+00> : vector<16x16xf32>
    %91 = tpu.matmul %88, %89, %cst_34 {dimension_numbers = #tpu.dot_dimension_numbers<[1], [1], [0], [0], [0, 0, 1, 0], [], []>} : vector<16x8xf32>, vector<16x8xf32>, vector<16x16xf32> -> vector<16x16xf32>
    %cst_35 = arith.constant 0.353553385 : f32
    %92 = vector.broadcast %cst_35 : f32 to vector<16x16xf32>
    %93 = arith.mulf %91, %92 : vector<16x16xf32>
    %94 = arith.addf %93, %24 : vector<16x16xf32>
    %cst_36 = arith.constant dense<0xFF800000> : vector<16xf32>
    %95 = vector.multi_reduction <maximumf>, %94, %cst_36 [1] : vector<16x16xf32> to vector<16xf32>
    %96 = vector.shape_cast %95 : vector<16xf32> to vector<16x1xf32>
    %97 = vector.broadcast %96 : vector<16x1xf32> to vector<16x16xf32>
    %98 = arith.subf %94, %97 : vector<16x16xf32>
    %99 = math.exp %98 : vector<16x16xf32>
    %cst_37 = arith.constant dense<0.000000e+00> : vector<16xf32>
    %100 = vector.multi_reduction <add>, %99, %cst_37 [1] : vector<16x16xf32> to vector<16xf32>
    %101 = vector.shape_cast %100 : vector<16xf32> to vector<16x1xf32>
    %102 = vector.broadcast %101 : vector<16x1xf32> to vector<16x16xf32>
    %103 = arith.divf %99, %102 : vector<16x16xf32>
    %cst_38 = arith.constant dense<0.000000e+00> : vector<16x8xf32>
    %104 = tpu.matmul %103, %90, %cst_38 {dimension_numbers = #tpu.dot_dimension_numbers<[1], [0], [0], [1], [0, 0, 1, 1], [], []>} : vector<16x16xf32>, vector<16x8xf32>, vector<16x8xf32> -> vector<16x8xf32>
    %c0_39 = arith.constant 0 : index
    %c16_40 = arith.constant 16 : index
    %105 = vector.load %arg9[%c0_39, %c16_40] : memref<16x32xf32, #tpu.memory_space<vmem>>, vector<16x8xf32>
    tpu.vector_store %arg9[%c0_39, %c16_40], %104 {strides = array<i32>} : memref<16x32xf32, #tpu.memory_space<vmem>>, vector<16x8xf32>,
    %106 = vector.extract_strided_slice %51 {offsets = [0, 24], sizes = [16, 8], strides = [1, 1]} : vector<16x128xf32> to vector<16x8xf32>
    %107 = vector.extract_strided_slice %51 {offsets = [0, 56], sizes = [16, 8], strides = [1, 1]} : vector<16x128xf32> to vector<16x8xf32>
    %108 = vector.extract_strided_slice %51 {offsets = [0, 88], sizes = [16, 8], strides = [1, 1]} : vector<16x128xf32> to vector<16x8xf32>
    %cst_41 = arith.constant dense<0.000000e+00> : vector<16x16xf32>
    %109 = tpu.matmul %106, %107, %cst_41 {dimension_numbers = #tpu.dot_dimension_numbers<[1], [1], [0], [0], [0, 0, 1, 0], [], []>} : vector<16x8xf32>, vector<16x8xf32>, vector<16x16xf32> -> vector<16x16xf32>
    %cst_42 = arith.constant 0.353553385 : f32
    %110 = vector.broadcast %cst_42 : f32 to vector<16x16xf32>
    %111 = arith.mulf %109, %110 : vector<16x16xf32>
    %112 = arith.addf %111, %24 : vector<16x16xf32>
    %cst_43 = arith.constant dense<0xFF800000> : vector<16xf32>
    %113 = vector.multi_reduction <maximumf>, %112, %cst_43 [1] : vector<16x16xf32> to vector<16xf32>
    %114 = vector.shape_cast %113 : vector<16xf32> to vector<16x1xf32>
    %115 = vector.broadcast %114 : vector<16x1xf32> to vector<16x16xf32>
    %116 = arith.subf %112, %115 : vector<16x16xf32>
    %117 = math.exp %116 : vector<16x16xf32>
    %cst_44 = arith.constant dense<0.000000e+00> : vector<16xf32>
    %118 = vector.multi_reduction <add>, %117, %cst_44 [1] : vector<16x16xf32> to vector<16xf32>
    %119 = vector.shape_cast %118 : vector<16xf32> to vector<16x1xf32>
    %120 = vector.broadcast %119 : vector<16x1xf32> to vector<16x16xf32>
    %121 = arith.divf %117, %120 : vector<16x16xf32>
    %cst_45 = arith.constant dense<0.000000e+00> : vector<16x8xf32>
    %122 = tpu.matmul %121, %108, %cst_45 {dimension_numbers = #tpu.dot_dimension_numbers<[1], [0], [0], [1], [0, 0, 1, 1], [], []>} : vector<16x16xf32>, vector<16x8xf32>, vector<16x8xf32> -> vector<16x8xf32>
    %c0_46 = arith.constant 0 : index
    %c24 = arith.constant 24 : index
    %123 = vector.load %arg9[%c0_46, %c24] : memref<16x32xf32, #tpu.memory_space<vmem>>, vector<16x8xf32>
    tpu.vector_store %arg9[%c0_46, %c24], %122 {strides = array<i32>} : memref<16x32xf32, #tpu.memory_space<vmem>>, vector<16x8xf32>,
    %c24_47 = arith.constant 24 : index
    %c0_48 = arith.constant 0 : index
    %124 = vector.load %arg2[%c24_47, %c0_48] : memref<30x32xf32, #tpu.memory_space<vmem>>, vector<1x32xf32>
    %c0_49 = arith.constant 0 : index
    %c0_50 = arith.constant 0 : index
    %125 = vector.load %arg9[%c0_49, %c0_50] : memref<16x32xf32, #tpu.memory_space<vmem>>, vector<16x32xf32>
    %c0_51 = arith.constant 0 : index
    %c0_52 = arith.constant 0 : index
    %c0_53 = arith.constant 0 : index
    %126 = vector.load %arg4[%c0_51, %c0_52, %c0_53] : memref<2x32x32xf32, #tpu.memory_space<vmem>>, vector<1x32x32xf32>
    %127 = vector.shape_cast %126 : vector<1x32x32xf32> to vector<32x32xf32>
    %cst_54 = arith.constant dense<0.000000e+00> : vector<16x32xf32>
    %128 = tpu.matmul %125, %127, %cst_54 {dimension_numbers = #tpu.dot_dimension_numbers<[1], [0], [0], [1], [0, 0, 1, 1], [], []>} : vector<16x32xf32>, vector<32x32xf32>, vector<16x32xf32> -> vector<16x32xf32>
    %129 = vector.broadcast %124 : vector<1x32xf32> to vector<16x32xf32>
    %130 = arith.addf %128, %129 : vector<16x32xf32>
    %131 = arith.addf %4, %130 : vector<16x32xf32>
    %c20 = arith.constant 20 : index
    %c0_55 = arith.constant 0 : index
    %132 = vector.load %arg2[%c20, %c0_55] : memref<30x32xf32, #tpu.memory_space<vmem>>, vector<1x32xf32>
    %c22 = arith.constant 22 : index
    %c0_56 = arith.constant 0 : index
    %133 = vector.load %arg2[%c22, %c0_56] : memref<30x32xf32, #tpu.memory_space<vmem>>, vector<1x32xf32>
    %cst_57 = arith.constant dense<0.000000e+00> : vector<16xf32>
    %134 = vector.multi_reduction <add>, %131, %cst_57 [1] : vector<16x32xf32> to vector<16xf32>
    %135 = vector.shape_cast %134 : vector<16xf32> to vector<16x1xf32>
    %cst_58 = arith.constant 3.200000e+01 : f32
    %136 = vector.broadcast %cst_58 : f32 to vector<16x1xf32>
    %137 = arith.divf %135, %136 : vector<16x1xf32>
    %138 = vector.broadcast %137 : vector<16x1xf32> to vector<16x32xf32>
    %139 = arith.subf %131, %138 : vector<16x32xf32>
    %140 = arith.mulf %139, %139 : vector<16x32xf32>
    %cst_59 = arith.constant dense<0.000000e+00> : vector<16xf32>
    %141 = vector.multi_reduction <add>, %140, %cst_59 [1] : vector<16x32xf32> to vector<16xf32>
    %142 = vector.shape_cast %141 : vector<16xf32> to vector<16x1xf32>
    %cst_60 = arith.constant 3.200000e+01 : f32
    %143 = vector.broadcast %cst_60 : f32 to vector<16x1xf32>
    %144 = arith.divf %142, %143 : vector<16x1xf32>
    %145 = vector.broadcast %137 : vector<16x1xf32> to vector<16x32xf32>
    %146 = arith.subf %131, %145 : vector<16x32xf32>
    %cst_61 = arith.constant 9.99999974E-6 : f32
    %147 = vector.broadcast %cst_61 : f32 to vector<16x1xf32>
    %148 = arith.addf %144, %147 : vector<16x1xf32>
    %149 = math.rsqrt %148 : vector<16x1xf32>
    %150 = vector.broadcast %149 : vector<16x1xf32> to vector<16x32xf32>
    %151 = arith.mulf %146, %150 : vector<16x32xf32>
    %152 = vector.broadcast %132 : vector<1x32xf32> to vector<16x32xf32>
    %153 = arith.mulf %151, %152 : vector<16x32xf32>
    %154 = vector.broadcast %133 : vector<1x32xf32> to vector<16x32xf32>
    %155 = arith.addf %153, %154 : vector<16x32xf32>
    %c0_62 = arith.constant 0 : index
    %c0_63 = arith.constant 0 : index
    %c0_64 = arith.constant 0 : index
    %156 = vector.load %arg5[%c0_62, %c0_63, %c0_64] : memref<2x33x128xf32, #tpu.memory_space<vmem>>, vector<1x33x128xf32>
    %157 = vector.shape_cast %156 : vector<1x33x128xf32> to vector<33x128xf32>
    %158 = vector.extract_strided_slice %157 {offsets = [0, 0], sizes = [32, 128], strides = [1, 1]} : vector<33x128xf32> to vector<32x128xf32>
    %cst_65 = arith.constant dense<0.000000e+00> : vector<16x128xf32>
    %159 = tpu.matmul %155, %158, %cst_65 {dimension_numbers = #tpu.dot_dimension_numbers<[1], [0], [0], [1], [0, 0, 1, 1], [], []>} : vector<16x32xf32>, vector<32x128xf32>, vector<16x128xf32> -> vector<16x128xf32>
    %160 = vector.extract_strided_slice %157 {offsets = [32, 0], sizes = [1, 128], strides = [1, 1]} : vector<33x128xf32> to vector<1x128xf32>
    %161 = vector.broadcast %160 : vector<1x128xf32> to vector<16x128xf32>
    %162 = arith.addf %159, %161 : vector<16x128xf32>
    %cst_66 = arith.constant 5.000000e-01 : f32
    %163 = vector.broadcast %cst_66 : f32 to vector<16x128xf32>
    %164 = arith.mulf %163, %162 : vector<16x128xf32>
    %cst_67 = arith.constant 0.707106769 : f32
    %165 = vector.broadcast %cst_67 : f32 to vector<16x128xf32>
    %166 = arith.mulf %162, %165 : vector<16x128xf32>
    %167 = math.erf %166 : vector<16x128xf32>
    %cst_68 = arith.constant 1.000000e+00 : f32
    %168 = vector.broadcast %cst_68 : f32 to vector<16x128xf32>
    %169 = arith.addf %168, %167 : vector<16x128xf32>
    %170 = arith.mulf %164, %169 : vector<16x128xf32>
    %c0_69 = arith.constant 0 : index
    %c0_70 = arith.constant 0 : index
    %c0_71 = arith.constant 0 : index
    %171 = vector.load %arg6[%c0_69, %c0_70, %c0_71] : memref<2x128x32xf32, #tpu.memory_space<vmem>>, vector<1x128x32xf32>
    %172 = vector.shape_cast %171 : vector<1x128x32xf32> to vector<128x32xf32>
    %cst_72 = arith.constant dense<0.000000e+00> : vector<16x32xf32>
    %173 = tpu.matmul %170, %172, %cst_72 {dimension_numbers = #tpu.dot_dimension_numbers<[1], [0], [0], [1], [0, 0, 1, 1], [], []>} : vector<16x128xf32>, vector<128x32xf32>, vector<16x32xf32> -> vector<16x32xf32>
    %c26 = arith.constant 26 : index
    %c0_73 = arith.constant 0 : index
    %174 = vector.load %arg2[%c26, %c0_73] : memref<30x32xf32, #tpu.memory_space<vmem>>, vector<1x32xf32>
    %175 = vector.broadcast %174 : vector<1x32xf32> to vector<16x32xf32>
    %176 = arith.addf %173, %175 : vector<16x32xf32>
    %177 = arith.addf %131, %176 : vector<16x32xf32>
    %c17 = arith.constant 17 : index
    %c0_74 = arith.constant 0 : index
    %178 = vector.load %arg2[%c17, %c0_74] : memref<30x32xf32, #tpu.memory_space<vmem>>, vector<1x32xf32>
    %c19 = arith.constant 19 : index
    %c0_75 = arith.constant 0 : index
    %179 = vector.load %arg2[%c19, %c0_75] : memref<30x32xf32, #tpu.memory_space<vmem>>, vector<1x32xf32>
    %cst_76 = arith.constant dense<0.000000e+00> : vector<16xf32>
    %180 = vector.multi_reduction <add>, %177, %cst_76 [1] : vector<16x32xf32> to vector<16xf32>
    %181 = vector.shape_cast %180 : vector<16xf32> to vector<16x1xf32>
    %cst_77 = arith.constant 3.200000e+01 : f32
    %182 = vector.broadcast %cst_77 : f32 to vector<16x1xf32>
    %183 = arith.divf %181, %182 : vector<16x1xf32>
    %184 = vector.broadcast %183 : vector<16x1xf32> to vector<16x32xf32>
    %185 = arith.subf %177, %184 : vector<16x32xf32>
    %186 = arith.mulf %185, %185 : vector<16x32xf32>
    %cst_78 = arith.constant dense<0.000000e+00> : vector<16xf32>
    %187 = vector.multi_reduction <add>, %186, %cst_78 [1] : vector<16x32xf32> to vector<16xf32>
    %188 = vector.shape_cast %187 : vector<16xf32> to vector<16x1xf32>
    %cst_79 = arith.constant 3.200000e+01 : f32
    %189 = vector.broadcast %cst_79 : f32 to vector<16x1xf32>
    %190 = arith.divf %188, %189 : vector<16x1xf32>
    %191 = vector.broadcast %183 : vector<16x1xf32> to vector<16x32xf32>
    %192 = arith.subf %177, %191 : vector<16x32xf32>
    %cst_80 = arith.constant 9.99999974E-6 : f32
    %193 = vector.broadcast %cst_80 : f32 to vector<16x1xf32>
    %194 = arith.addf %190, %193 : vector<16x1xf32>
    %195 = math.rsqrt %194 : vector<16x1xf32>
    %196 = vector.broadcast %195 : vector<16x1xf32> to vector<16x32xf32>
    %197 = arith.mulf %192, %196 : vector<16x32xf32>
    %198 = vector.broadcast %178 : vector<1x32xf32> to vector<16x32xf32>
    %199 = arith.mulf %197, %198 : vector<16x32xf32>
    %200 = vector.broadcast %179 : vector<1x32xf32> to vector<16x32xf32>
    %201 = arith.addf %199, %200 : vector<16x32xf32>
    %c1 = arith.constant 1 : index
    %c0_81 = arith.constant 0 : index
    %c0_82 = arith.constant 0 : index
    %202 = vector.load %arg3[%c1, %c0_81, %c0_82] : memref<2x32x128xf32, #tpu.memory_space<vmem>>, vector<1x32x128xf32>
    %203 = vector.shape_cast %202 : vector<1x32x128xf32> to vector<32x128xf32>
    %cst_83 = arith.constant dense<0.000000e+00> : vector<16x128xf32>
    %204 = tpu.matmul %201, %203, %cst_83 {dimension_numbers = #tpu.dot_dimension_numbers<[1], [0], [0], [1], [0, 0, 1, 1], [], []>} : vector<16x32xf32>, vector<32x128xf32>, vector<16x128xf32> -> vector<16x128xf32>
    %205 = vector.extract_strided_slice %204 {offsets = [0, 0], sizes = [16, 8], strides = [1, 1]} : vector<16x128xf32> to vector<16x8xf32>
    %206 = vector.extract_strided_slice %204 {offsets = [0, 32], sizes = [16, 8], strides = [1, 1]} : vector<16x128xf32> to vector<16x8xf32>
    %207 = vector.extract_strided_slice %204 {offsets = [0, 64], sizes = [16, 8], strides = [1, 1]} : vector<16x128xf32> to vector<16x8xf32>
    %cst_84 = arith.constant dense<0.000000e+00> : vector<16x16xf32>
    %208 = tpu.matmul %205, %206, %cst_84 {dimension_numbers = #tpu.dot_dimension_numbers<[1], [1], [0], [0], [0, 0, 1, 0], [], []>} : vector<16x8xf32>, vector<16x8xf32>, vector<16x16xf32> -> vector<16x16xf32>
    %cst_85 = arith.constant 0.353553385 : f32
    %209 = vector.broadcast %cst_85 : f32 to vector<16x16xf32>
    %210 = arith.mulf %208, %209 : vector<16x16xf32>
    %211 = arith.addf %210, %24 : vector<16x16xf32>
    %cst_86 = arith.constant dense<0xFF800000> : vector<16xf32>
    %212 = vector.multi_reduction <maximumf>, %211, %cst_86 [1] : vector<16x16xf32> to vector<16xf32>
    %213 = vector.shape_cast %212 : vector<16xf32> to vector<16x1xf32>
    %214 = vector.broadcast %213 : vector<16x1xf32> to vector<16x16xf32>
    %215 = arith.subf %211, %214 : vector<16x16xf32>
    %216 = math.exp %215 : vector<16x16xf32>
    %cst_87 = arith.constant dense<0.000000e+00> : vector<16xf32>
    %217 = vector.multi_reduction <add>, %216, %cst_87 [1] : vector<16x16xf32> to vector<16xf32>
    %218 = vector.shape_cast %217 : vector<16xf32> to vector<16x1xf32>
    %219 = vector.broadcast %218 : vector<16x1xf32> to vector<16x16xf32>
    %220 = arith.divf %216, %219 : vector<16x16xf32>
    %cst_88 = arith.constant dense<0.000000e+00> : vector<16x8xf32>
    %221 = tpu.matmul %220, %207, %cst_88 {dimension_numbers = #tpu.dot_dimension_numbers<[1], [0], [0], [1], [0, 0, 1, 1], [], []>} : vector<16x16xf32>, vector<16x8xf32>, vector<16x8xf32> -> vector<16x8xf32>
    %c0_89 = arith.constant 0 : index
    %c0_90 = arith.constant 0 : index
    %222 = vector.load %arg9[%c0_89, %c0_90] : memref<16x32xf32, #tpu.memory_space<vmem>>, vector<16x8xf32>
    tpu.vector_store %arg9[%c0_89, %c0_90], %221 {strides = array<i32>} : memref<16x32xf32, #tpu.memory_space<vmem>>, vector<16x8xf32>,
    %223 = vector.extract_strided_slice %204 {offsets = [0, 8], sizes = [16, 8], strides = [1, 1]} : vector<16x128xf32> to vector<16x8xf32>
    %224 = vector.extract_strided_slice %204 {offsets = [0, 40], sizes = [16, 8], strides = [1, 1]} : vector<16x128xf32> to vector<16x8xf32>
    %225 = vector.extract_strided_slice %204 {offsets = [0, 72], sizes = [16, 8], strides = [1, 1]} : vector<16x128xf32> to vector<16x8xf32>
    %cst_91 = arith.constant dense<0.000000e+00> : vector<16x16xf32>
    %226 = tpu.matmul %223, %224, %cst_91 {dimension_numbers = #tpu.dot_dimension_numbers<[1], [1], [0], [0], [0, 0, 1, 0], [], []>} : vector<16x8xf32>, vector<16x8xf32>, vector<16x16xf32> -> vector<16x16xf32>
    %cst_92 = arith.constant 0.353553385 : f32
    %227 = vector.broadcast %cst_92 : f32 to vector<16x16xf32>
    %228 = arith.mulf %226, %227 : vector<16x16xf32>
    %229 = arith.addf %228, %24 : vector<16x16xf32>
    %cst_93 = arith.constant dense<0xFF800000> : vector<16xf32>
    %230 = vector.multi_reduction <maximumf>, %229, %cst_93 [1] : vector<16x16xf32> to vector<16xf32>
    %231 = vector.shape_cast %230 : vector<16xf32> to vector<16x1xf32>
    %232 = vector.broadcast %231 : vector<16x1xf32> to vector<16x16xf32>
    %233 = arith.subf %229, %232 : vector<16x16xf32>
    %234 = math.exp %233 : vector<16x16xf32>
    %cst_94 = arith.constant dense<0.000000e+00> : vector<16xf32>
    %235 = vector.multi_reduction <add>, %234, %cst_94 [1] : vector<16x16xf32> to vector<16xf32>
    %236 = vector.shape_cast %235 : vector<16xf32> to vector<16x1xf32>
    %237 = vector.broadcast %236 : vector<16x1xf32> to vector<16x16xf32>
    %238 = arith.divf %234, %237 : vector<16x16xf32>
    %cst_95 = arith.constant dense<0.000000e+00> : vector<16x8xf32>
    %239 = tpu.matmul %238, %225, %cst_95 {dimension_numbers = #tpu.dot_dimension_numbers<[1], [0], [0], [1], [0, 0, 1, 1], [], []>} : vector<16x16xf32>, vector<16x8xf32>, vector<16x8xf32> -> vector<16x8xf32>
    %c0_96 = arith.constant 0 : index
    %c8_97 = arith.constant 8 : index
    %240 = vector.load %arg9[%c0_96, %c8_97] : memref<16x32xf32, #tpu.memory_space<vmem>>, vector<16x8xf32>
    tpu.vector_store %arg9[%c0_96, %c8_97], %239 {strides = array<i32>} : memref<16x32xf32, #tpu.memory_space<vmem>>, vector<16x8xf32>,
    %241 = vector.extract_strided_slice %204 {offsets = [0, 16], sizes = [16, 8], strides = [1, 1]} : vector<16x128xf32> to vector<16x8xf32>
    %242 = vector.extract_strided_slice %204 {offsets = [0, 48], sizes = [16, 8], strides = [1, 1]} : vector<16x128xf32> to vector<16x8xf32>
    %243 = vector.extract_strided_slice %204 {offsets = [0, 80], sizes = [16, 8], strides = [1, 1]} : vector<16x128xf32> to vector<16x8xf32>
    %cst_98 = arith.constant dense<0.000000e+00> : vector<16x16xf32>
    %244 = tpu.matmul %241, %242, %cst_98 {dimension_numbers = #tpu.dot_dimension_numbers<[1], [1], [0], [0], [0, 0, 1, 0], [], []>} : vector<16x8xf32>, vector<16x8xf32>, vector<16x16xf32> -> vector<16x16xf32>
    %cst_99 = arith.constant 0.353553385 : f32
    %245 = vector.broadcast %cst_99 : f32 to vector<16x16xf32>
    %246 = arith.mulf %244, %245 : vector<16x16xf32>
    %247 = arith.addf %246, %24 : vector<16x16xf32>
    %cst_100 = arith.constant dense<0xFF800000> : vector<16xf32>
    %248 = vector.multi_reduction <maximumf>, %247, %cst_100 [1] : vector<16x16xf32> to vector<16xf32>
    %249 = vector.shape_cast %248 : vector<16xf32> to vector<16x1xf32>
    %250 = vector.broadcast %249 : vector<16x1xf32> to vector<16x16xf32>
    %251 = arith.subf %247, %250 : vector<16x16xf32>
    %252 = math.exp %251 : vector<16x16xf32>
    %cst_101 = arith.constant dense<0.000000e+00> : vector<16xf32>
    %253 = vector.multi_reduction <add>, %252, %cst_101 [1] : vector<16x16xf32> to vector<16xf32>
    %254 = vector.shape_cast %253 : vector<16xf32> to vector<16x1xf32>
    %255 = vector.broadcast %254 : vector<16x1xf32> to vector<16x16xf32>
    %256 = arith.divf %252, %255 : vector<16x16xf32>
    %cst_102 = arith.constant dense<0.000000e+00> : vector<16x8xf32>
    %257 = tpu.matmul %256, %243, %cst_102 {dimension_numbers = #tpu.dot_dimension_numbers<[1], [0], [0], [1], [0, 0, 1, 1], [], []>} : vector<16x16xf32>, vector<16x8xf32>, vector<16x8xf32> -> vector<16x8xf32>
    %c0_103 = arith.constant 0 : index
    %c16_104 = arith.constant 16 : index
    %258 = vector.load %arg9[%c0_103, %c16_104] : memref<16x32xf32, #tpu.memory_space<vmem>>, vector<16x8xf32>
    tpu.vector_store %arg9[%c0_103, %c16_104], %257 {strides = array<i32>} : memref<16x32xf32, #tpu.memory_space<vmem>>, vector<16x8xf32>,
    %259 = vector.extract_strided_slice %204 {offsets = [0, 24], sizes = [16, 8], strides = [1, 1]} : vector<16x128xf32> to vector<16x8xf32>
    %260 = vector.extract_strided_slice %204 {offsets = [0, 56], sizes = [16, 8], strides = [1, 1]} : vector<16x128xf32> to vector<16x8xf32>
    %261 = vector.extract_strided_slice %204 {offsets = [0, 88], sizes = [16, 8], strides = [1, 1]} : vector<16x128xf32> to vector<16x8xf32>
    %cst_105 = arith.constant dense<0.000000e+00> : vector<16x16xf32>
    %262 = tpu.matmul %259, %260, %cst_105 {dimension_numbers = #tpu.dot_dimension_numbers<[1], [1], [0], [0], [0, 0, 1, 0], [], []>} : vector<16x8xf32>, vector<16x8xf32>, vector<16x16xf32> -> vector<16x16xf32>
    %cst_106 = arith.constant 0.353553385 : f32
    %263 = vector.broadcast %cst_106 : f32 to vector<16x16xf32>
    %264 = arith.mulf %262, %263 : vector<16x16xf32>
    %265 = arith.addf %264, %24 : vector<16x16xf32>
    %cst_107 = arith.constant dense<0xFF800000> : vector<16xf32>
    %266 = vector.multi_reduction <maximumf>, %265, %cst_107 [1] : vector<16x16xf32> to vector<16xf32>
    %267 = vector.shape_cast %266 : vector<16xf32> to vector<16x1xf32>
    %268 = vector.broadcast %267 : vector<16x1xf32> to vector<16x16xf32>
    %269 = arith.subf %265, %268 : vector<16x16xf32>
    %270 = math.exp %269 : vector<16x16xf32>
    %cst_108 = arith.constant dense<0.000000e+00> : vector<16xf32>
    %271 = vector.multi_reduction <add>, %270, %cst_108 [1] : vector<16x16xf32> to vector<16xf32>
    %272 = vector.shape_cast %271 : vector<16xf32> to vector<16x1xf32>
    %273 = vector.broadcast %272 : vector<16x1xf32> to vector<16x16xf32>
    %274 = arith.divf %270, %273 : vector<16x16xf32>
    %cst_109 = arith.constant dense<0.000000e+00> : vector<16x8xf32>
    %275 = tpu.matmul %274, %261, %cst_109 {dimension_numbers = #tpu.dot_dimension_numbers<[1], [0], [0], [1], [0, 0, 1, 1], [], []>} : vector<16x16xf32>, vector<16x8xf32>, vector<16x8xf32> -> vector<16x8xf32>
    %c0_110 = arith.constant 0 : index
    %c24_111 = arith.constant 24 : index
    %276 = vector.load %arg9[%c0_110, %c24_111] : memref<16x32xf32, #tpu.memory_space<vmem>>, vector<16x8xf32>
    tpu.vector_store %arg9[%c0_110, %c24_111], %275 {strides = array<i32>} : memref<16x32xf32, #tpu.memory_space<vmem>>, vector<16x8xf32>,
    %c25 = arith.constant 25 : index
    %c0_112 = arith.constant 0 : index
    %277 = vector.load %arg2[%c25, %c0_112] : memref<30x32xf32, #tpu.memory_space<vmem>>, vector<1x32xf32>
    %c0_113 = arith.constant 0 : index
    %c0_114 = arith.constant 0 : index
    %278 = vector.load %arg9[%c0_113, %c0_114] : memref<16x32xf32, #tpu.memory_space<vmem>>, vector<16x32xf32>
    %c1_115 = arith.constant 1 : index
    %c0_116 = arith.constant 0 : index
    %c0_117 = arith.constant 0 : index
    %279 = vector.load %arg4[%c1_115, %c0_116, %c0_117] : memref<2x32x32xf32, #tpu.memory_space<vmem>>, vector<1x32x32xf32>
    %280 = vector.shape_cast %279 : vector<1x32x32xf32> to vector<32x32xf32>
    %cst_118 = arith.constant dense<0.000000e+00> : vector<16x32xf32>
    %281 = tpu.matmul %278, %280, %cst_118 {dimension_numbers = #tpu.dot_dimension_numbers<[1], [0], [0], [1], [0, 0, 1, 1], [], []>} : vector<16x32xf32>, vector<32x32xf32>, vector<16x32xf32> -> vector<16x32xf32>
    %282 = vector.broadcast %277 : vector<1x32xf32> to vector<16x32xf32>
    %283 = arith.addf %281, %282 : vector<16x32xf32>
    %284 = arith.addf %177, %283 : vector<16x32xf32>
    %c21 = arith.constant 21 : index
    %c0_119 = arith.constant 0 : index
    %285 = vector.load %arg2[%c21, %c0_119] : memref<30x32xf32, #tpu.memory_space<vmem>>, vector<1x32xf32>
    %c23 = arith.constant 23 : index
    %c0_120 = arith.constant 0 : index
    %286 = vector.load %arg2[%c23, %c0_120] : memref<30x32xf32, #tpu.memory_space<vmem>>, vector<1x32xf32>
    %cst_121 = arith.constant dense<0.000000e+00> : vector<16xf32>
    %287 = vector.multi_reduction <add>, %284, %cst_121 [1] : vector<16x32xf32> to vector<16xf32>
    %288 = vector.shape_cast %287 : vector<16xf32> to vector<16x1xf32>
    %cst_122 = arith.constant 3.200000e+01 : f32
    %289 = vector.broadcast %cst_122 : f32 to vector<16x1xf32>
    %290 = arith.divf %288, %289 : vector<16x1xf32>
    %291 = vector.broadcast %290 : vector<16x1xf32> to vector<16x32xf32>
    %292 = arith.subf %284, %291 : vector<16x32xf32>
    %293 = arith.mulf %292, %292 : vector<16x32xf32>
    %cst_123 = arith.constant dense<0.000000e+00> : vector<16xf32>
    %294 = vector.multi_reduction <add>, %293, %cst_123 [1] : vector<16x32xf32> to vector<16xf32>
    %295 = vector.shape_cast %294 : vector<16xf32> to vector<16x1xf32>
    %cst_124 = arith.constant 3.200000e+01 : f32
    %296 = vector.broadcast %cst_124 : f32 to vector<16x1xf32>
    %297 = arith.divf %295, %296 : vector<16x1xf32>
    %298 = vector.broadcast %290 : vector<16x1xf32> to vector<16x32xf32>
    %299 = arith.subf %284, %298 : vector<16x32xf32>
    %cst_125 = arith.constant 9.99999974E-6 : f32
    %300 = vector.broadcast %cst_125 : f32 to vector<16x1xf32>
    %301 = arith.addf %297, %300 : vector<16x1xf32>
    %302 = math.rsqrt %301 : vector<16x1xf32>
    %303 = vector.broadcast %302 : vector<16x1xf32> to vector<16x32xf32>
    %304 = arith.mulf %299, %303 : vector<16x32xf32>
    %305 = vector.broadcast %285 : vector<1x32xf32> to vector<16x32xf32>
    %306 = arith.mulf %304, %305 : vector<16x32xf32>
    %307 = vector.broadcast %286 : vector<1x32xf32> to vector<16x32xf32>
    %308 = arith.addf %306, %307 : vector<16x32xf32>
    %c1_126 = arith.constant 1 : index
    %c0_127 = arith.constant 0 : index
    %c0_128 = arith.constant 0 : index
    %309 = vector.load %arg5[%c1_126, %c0_127, %c0_128] : memref<2x33x128xf32, #tpu.memory_space<vmem>>, vector<1x33x128xf32>
    %310 = vector.shape_cast %309 : vector<1x33x128xf32> to vector<33x128xf32>
    %311 = vector.extract_strided_slice %310 {offsets = [0, 0], sizes = [32, 128], strides = [1, 1]} : vector<33x128xf32> to vector<32x128xf32>
    %cst_129 = arith.constant dense<0.000000e+00> : vector<16x128xf32>
    %312 = tpu.matmul %308, %311, %cst_129 {dimension_numbers = #tpu.dot_dimension_numbers<[1], [0], [0], [1], [0, 0, 1, 1], [], []>} : vector<16x32xf32>, vector<32x128xf32>, vector<16x128xf32> -> vector<16x128xf32>
    %313 = vector.extract_strided_slice %310 {offsets = [32, 0], sizes = [1, 128], strides = [1, 1]} : vector<33x128xf32> to vector<1x128xf32>
    %314 = vector.broadcast %313 : vector<1x128xf32> to vector<16x128xf32>
    %315 = arith.addf %312, %314 : vector<16x128xf32>
    %cst_130 = arith.constant 5.000000e-01 : f32
    %316 = vector.broadcast %cst_130 : f32 to vector<16x128xf32>
    %317 = arith.mulf %316, %315 : vector<16x128xf32>
    %cst_131 = arith.constant 0.707106769 : f32
    %318 = vector.broadcast %cst_131 : f32 to vector<16x128xf32>
    %319 = arith.mulf %315, %318 : vector<16x128xf32>
    %320 = math.erf %319 : vector<16x128xf32>
    %cst_132 = arith.constant 1.000000e+00 : f32
    %321 = vector.broadcast %cst_132 : f32 to vector<16x128xf32>
    %322 = arith.addf %321, %320 : vector<16x128xf32>
    %323 = arith.mulf %317, %322 : vector<16x128xf32>
    %c1_133 = arith.constant 1 : index
    %c0_134 = arith.constant 0 : index
    %c0_135 = arith.constant 0 : index
    %324 = vector.load %arg6[%c1_133, %c0_134, %c0_135] : memref<2x128x32xf32, #tpu.memory_space<vmem>>, vector<1x128x32xf32>
    %325 = vector.shape_cast %324 : vector<1x128x32xf32> to vector<128x32xf32>
    %cst_136 = arith.constant dense<0.000000e+00> : vector<16x32xf32>
    %326 = tpu.matmul %323, %325, %cst_136 {dimension_numbers = #tpu.dot_dimension_numbers<[1], [0], [0], [1], [0, 0, 1, 1], [], []>} : vector<16x128xf32>, vector<128x32xf32>, vector<16x32xf32> -> vector<16x32xf32>
    %c27 = arith.constant 27 : index
    %c0_137 = arith.constant 0 : index
    %327 = vector.load %arg2[%c27, %c0_137] : memref<30x32xf32, #tpu.memory_space<vmem>>, vector<1x32xf32>
    %328 = vector.broadcast %327 : vector<1x32xf32> to vector<16x32xf32>
    %329 = arith.addf %326, %328 : vector<16x32xf32>
    %330 = arith.addf %284, %329 : vector<16x32xf32>
    %c28 = arith.constant 28 : index
    %c0_138 = arith.constant 0 : index
    %331 = vector.load %arg2[%c28, %c0_138] : memref<30x32xf32, #tpu.memory_space<vmem>>, vector<1x32xf32>
    %c29 = arith.constant 29 : index
    %c0_139 = arith.constant 0 : index
    %332 = vector.load %arg2[%c29, %c0_139] : memref<30x32xf32, #tpu.memory_space<vmem>>, vector<1x32xf32>
    %cst_140 = arith.constant dense<0.000000e+00> : vector<16xf32>
    %333 = vector.multi_reduction <add>, %330, %cst_140 [1] : vector<16x32xf32> to vector<16xf32>
    %334 = vector.shape_cast %333 : vector<16xf32> to vector<16x1xf32>
    %cst_141 = arith.constant 3.200000e+01 : f32
    %335 = vector.broadcast %cst_141 : f32 to vector<16x1xf32>
    %336 = arith.divf %334, %335 : vector<16x1xf32>
    %337 = vector.broadcast %336 : vector<16x1xf32> to vector<16x32xf32>
    %338 = arith.subf %330, %337 : vector<16x32xf32>
    %339 = arith.mulf %338, %338 : vector<16x32xf32>
    %cst_142 = arith.constant dense<0.000000e+00> : vector<16xf32>
    %340 = vector.multi_reduction <add>, %339, %cst_142 [1] : vector<16x32xf32> to vector<16xf32>
    %341 = vector.shape_cast %340 : vector<16xf32> to vector<16x1xf32>
    %cst_143 = arith.constant 3.200000e+01 : f32
    %342 = vector.broadcast %cst_143 : f32 to vector<16x1xf32>
    %343 = arith.divf %341, %342 : vector<16x1xf32>
    %344 = vector.broadcast %336 : vector<16x1xf32> to vector<16x32xf32>
    %345 = arith.subf %330, %344 : vector<16x32xf32>
    %cst_144 = arith.constant 9.99999974E-6 : f32
    %346 = vector.broadcast %cst_144 : f32 to vector<16x1xf32>
    %347 = arith.addf %343, %346 : vector<16x1xf32>
    %348 = math.rsqrt %347 : vector<16x1xf32>
    %349 = vector.broadcast %348 : vector<16x1xf32> to vector<16x32xf32>
    %350 = arith.mulf %345, %349 : vector<16x32xf32>
    %351 = vector.broadcast %331 : vector<1x32xf32> to vector<16x32xf32>
    %352 = arith.mulf %350, %351 : vector<16x32xf32>
    %353 = vector.broadcast %332 : vector<1x32xf32> to vector<16x32xf32>
    %354 = arith.addf %352, %353 : vector<16x32xf32>
    %c0_145 = arith.constant 0 : index
    %c0_146 = arith.constant 0 : index
    %355 = vector.load %arg7[%c0_145, %c0_146] : memref<33x2xf32, #tpu.memory_space<vmem>>, vector<32x2xf32>
    %cst_147 = arith.constant dense<0.000000e+00> : vector<16x2xf32>
    %356 = tpu.matmul %354, %355, %cst_147 {dimension_numbers = #tpu.dot_dimension_numbers<[1], [0], [0], [1], [0, 0, 1, 1], [], []>} : vector<16x32xf32>, vector<32x2xf32>, vector<16x2xf32> -> vector<16x2xf32>
    %c32 = arith.constant 32 : index
    %c0_148 = arith.constant 0 : index
    %357 = vector.load %arg7[%c32, %c0_148] : memref<33x2xf32, #tpu.memory_space<vmem>>, vector<1x2xf32>
    %358 = vector.broadcast %357 : vector<1x2xf32> to vector<16x2xf32>
    %359 = arith.addf %356, %358 : vector<16x2xf32>
    %360 = vector.extract_strided_slice %359 {offsets = [0, 0], sizes = [1, 2], strides = [1, 1]} : vector<16x2xf32> to vector<1x2xf32>
    %c0_149 = arith.constant 0 : index
    %c0_150 = arith.constant 0 : index
    %361 = vector.load %arg8[%c0_149, %c0_150] : memref<2x2xf32, #tpu.memory_space<vmem>>, vector<1x2xf32>
    tpu.vector_store %arg8[%c0_149, %c0_150], %360 {strides = array<i32>} : memref<2x2xf32, #tpu.memory_space<vmem>>, vector<1x2xf32>,
    %362 = vector.extract_strided_slice %359 {offsets = [8, 0], sizes = [1, 2], strides = [1, 1]} : vector<16x2xf32> to vector<1x2xf32>
    %c1_151 = arith.constant 1 : index
    %c0_152 = arith.constant 0 : index
    %363 = vector.load %arg8[%c1_151, %c0_152] : memref<2x2xf32, #tpu.memory_space<vmem>>, vector<1x2xf32>
    tpu.vector_store %arg8[%c1_151, %c0_152], %362 {strides = array<i32>} : memref<2x2xf32, #tpu.memory_space<vmem>>, vector<1x2xf32>,
    return
  }
}

</mosaic_0001>

<bundles_post_ra>
// kernel: vit_forward.1
= control target key start
LH: loop header
LB: loop body
LE: loop exit
PB: predicated region body
PF: predicated region fallthrough
CT: control target
= control target key end

     0   :  { %s4333_s0 = inlined_call_operand.vmem [shape: f32[16,256], index: 0, kind: input, shape index: {}]   ;;  %s4334_s1 = inlined_call_operand.vmem [shape: f32[256,32], index: 1, kind: input, shape index: {}]   ;;  %s4335_s2 = inlined_call_operand.vmem [shape: f32[30,32], index: 2, kind: input, shape index: {}]   ;;  %s4336_s3 = inlined_call_operand.vmem [shape: f32[2,32,128], index: 3, kind: input, shape index: {}]   ;;  %s4337_s4 = inlined_call_operand.vmem [shape: f32[2,32,32], index: 4, kind: input, shape index: {}]   ;;  %s4338_s5 = inlined_call_operand.vmem [shape: f32[2,33,128], index: 5, kind: input, shape index: {}]   ;;  %s4339_s6 = inlined_call_operand.vmem [shape: f32[2,128,32], index: 6, kind: input, shape index: {}]   ;;  %s4340_s7 = inlined_call_operand.vmem [shape: f32[33,2], index: 7, kind: input, shape index: {}]   ;;  %s4341_s8 = inlined_call_operand.hbm [shape: f32[2,2], index: 8, kind: output, shape index: {}]  }
   0x1   :  { %v65_v0 = vld [vmem:[%s4334_s1 + $0xf8] sm:$0xff]  ;;  %v64_v2 = vld [vmem:[%s4334_s1 + $0xf0] sm:$0xff]  ;;  %v63_v4 = vld [vmem:[%s4334_s1 + $0xe8] sm:$0xff] }
   0x2   :  { %v49_v1 = vld [vmem:[%s4334_s1 + $0x78] sm:$0xff]  ;;  %3035 = vmatprep.subr.mxu0 %v65_v0  ;;  %v48_v3 = vld [vmem:[%s4334_s1 + $0x70] sm:$0xff]  ;;  %v47_v5 = vld [vmem:[%s4334_s1 + $0x68] sm:$0xff] }
   0x3   :  { %3036 = vmatpush3.msra.mxu0 %v49_v1  ;;  %v62_v6 = vld [vmem:[%s4334_s1 + $0xe0] sm:$0xff]  ;;  %v61_v8 = vld [vmem:[%s4334_s1 + $0xd8] sm:$0xff]  ;;  %v60_v10 = vld [vmem:[%s4334_s1 + $0xd0] sm:$0xff] }
   0x4   :  { %3037 = vmatprep.subr.mxu0 %v64_v2  ;;  %v46_v7 = vld [vmem:[%s4334_s1 + $0x60] sm:$0xff]  ;;  %v45_v9 = vld [vmem:[%s4334_s1 + $0x58] sm:$0xff]  ;;  %v44_v11 = vld [vmem:[%s4334_s1 + $0x50] sm:$0xff] }
   0x5   :  { %3038 = vmatpush3.msra.mxu0 %v48_v3  ;;  %v59_v12 = vld [vmem:[%s4334_s1 + $0xc8] sm:$0xff]  ;;  %v58_v15 = vld [vmem:[%s4334_s1 + $0xc0] sm:$0xff] }
   0x6   :  { %3039 = vmatprep.subr.mxu0 %v63_v4  ;;  %v31_v13 = vld [vmem:[%s4333_s0 + $0x8] sm:$0xff] }
   0x7   :  { %3040 = vmatpush3.msra.mxu0 %v47_v5  ;;  %v43_v14 = vld [vmem:[%s4334_s1 + $0x48] sm:$0xff]  ;;  %132 = vmatprep.mubr.f32.mxu0 %v31_v13 }
   0x8   :  { %3041 = vmatprep.subr.mxu0 %v62_v6 }
   0x9   :  { %3042 = vmatpush3.msra.mxu0 %v46_v7 }
   0xa   :  { %3043 = vmatprep.subr.mxu0 %v61_v8 }
   0xb   :  { %3044 = vmatpush3.msra.mxu0 %v45_v9 }
   0xc   :  { %3045 = vmatprep.subr.mxu0 %v60_v10 }
   0xd   :  { %3046 = vmatpush3.msra.mxu0 %v44_v11 }
   0xe   :  { %13 = vsyncpa [#allocation4], 0  ;;  %3047 = vmatprep.subr.mxu0 %v59_v12  ;;  %v42_v16 = vld [vmem:[%s4334_s1 + $0x40] sm:$0xff]  ;;  %v57_v17 = vld [vmem:[%s4334_s1 + $0xb8] sm:$0xff]  ;;  %vm165_vm0 = vcmask 261120   ;;  %vm296_vm1 = vcmask 64512  }
   0xf   :  { %3048 = vmatpush3.msra.mxu0 %v43_v14  ;;  %v41_v18 = vld [vmem:[%s4334_s1 + $0x38] sm:$0xff]  ;;  %v56_v19 = vld [vmem:[%s4334_s1 + $0xb0] sm:$0xff]  ;;  %v55_v21 = vld [vmem:[%s4334_s1 + $0xa8] sm:$0xff]  ;;  %s3605_s25 = smov 96   ;;  %vm3606_vm4 = vmmov 1   ;;  %vm384_vm13 = vcmask 130048  }
  0x10   :  { %3049 = vmatprep.subr.mxu0 %v58_v15  ;;  %v40_v20 = vld [vmem:[%s4334_s1 + $0x30] sm:$0xff]  ;;  %v39_v22 = vld [vmem:[%s4334_s1 + $0x28] sm:$0xff]  ;;  %v54_v23 = vld [vmem:[%s4334_s1 + $0xa0] sm:$0xff]  ;;  %s3608_s26 = smov 64   ;;  %s3609_s27 = smov 88   ;;  %vm708_vm14 = vcmask 130112  }
  0x11   :  { %3050 = vmatpush3.msra.mxu0 %v42_v16  ;;  %v38_v24 = vld [vmem:[%s4334_s1 + $0x20] sm:$0xff]  ;;  %v53_v25 = vld [vmem:[%s4334_s1 + $0x98] sm:$0xff]  ;;  %v52_v27 = vld [vmem:[%s4334_s1 + $0x90] sm:$0xff]  ;;  %s3610_s28 = smov 120   ;;  %s3611_s29 = smov 80   ;;  %vm923_vm15 = vcmask 195712  }
  0x12   :  { %3051 = vmatprep.subr.mxu0 %v57_v17  ;;  %v37_v26 = vld [vmem:[%s4334_s1 + $0x18] sm:$0xff]  ;;  %v36_v28 = vld [vmem:[%s4334_s1 + $0x10] sm:$0xff]  ;;  %v51_v29 = vld [vmem:[%s4334_s1 + $0x88] sm:$0xff]  ;;  %s3612_s30 = smov 112   ;;  %s3613_s9 = smov 56  }
  0x13   :  { %3052 = vmatpush3.msra.mxu0 %v41_v18  ;;  %v35_v30 = vld [vmem:[%s4334_s1 + $0x8] sm:$0xff]  ;;  %v50_v31 = vld [vmem:[%s4334_s1 + $0x80] sm:$0xff]  ;;  %v33_v34 = vld [vmem:[%s4333_s0 + $0x18] sm:$0xff]  ;;  %v146_v18 = vlaneseq  ;;  %s3614_s10 = smov 48   ;;  %s3616_s11 = smov 104  }
  0x14   :  { %3053 = vmatprep.subr.mxu0 %v56_v19  ;;  %v34_v32 = vld [vmem:[%s4334_s1] sm:$0xff]  ;;  %v32_v35 = vld [vmem:[%s4333_s0 + $0x10] sm:$0xff]  ;;  %v67_v42 = vld [vmem:[%s4335_s2 + $0x8] sm:$0xff]  ;;  %s3615_s1 = smov 72   ;;  %s3617_s12 = smov 40  }
  0x15   :  { %3054 = vmatpush3.msra.mxu0 %v40_v20  ;;  %v30_v33 = vld [vmem:[%s4333_s0] sm:$0xff]  ;;  %v208_v58 = vld [vmem:[%s4336_s3 + $0x18] sm:$0xff]  ;;  %v207_v59 = vld [vmem:[%s4336_s3 + $0x10] sm:$0xff]  ;;  %v147_v19 = vand.u32 127, %v146_v18  ;;  %s3618_s13 = smov 8   ;;  %s3619_s0 = smov 16  }
  0x16   :  { %3055 = vmatprep.subr.mxu0 %v55_v21  ;;  %v66_v37 = vld [vmem:[%s4335_s2] sm:$0xff]  ;;  %3215 = vmatprep.subr.mxu1 %v208_v58  ;;  %v206_v60 = vld [vmem:[%s4336_s3 + $0x8] sm:$0xff]  ;;  %v2927_v5 = vld [vmem:[%s4335_s2 + $0x10] ss:$0 sm:$0xff]  ;;  %v3607_v21 = vmov -1e+30  }
  0x17   :  { %3056 = vmatpush3.msra.mxu0 %v39_v22  ;;  %3216 = vmatpush3.msra.mxu1 %v208_v58  ;;  %v205_v61 = vld [vmem:[%s4336_s3] sm:$0xff]  ;;  %v2928_v7 = vld [vmem:[%s4335_s2 + $0x12] ss:$0 sm:$0xff]  ;;  %vm150_vm2 = vcmp.ge.s32.totalorder %v147_v19, 8  ;;  %vm156_vm3 = vcmp.lt.s32.totalorder %v147_v19, 13  ;;  %vm155_vm6 = vcmp.lt.s32.totalorder %v147_v19, 5 }
  0x18   :  { %3057 = vmatprep.subr.mxu0 %v54_v23  ;;  %3217 = vmatprep.subr.mxu1 %v207_v59  ;;  %vm152_vm5 = vmxor %vm3606_vm4, %vm150_vm2  ;;  %s3620_s22 = smov 24   ;;  %s3621_s16 = smov [#allocation3]  }
  0x19   :  { %3058 = vmatpush3.msra.mxu0 %v38_v24  ;;  %3218 = vmatpush3.msra.mxu1 %v207_v59  ;;  %vm157_vm7 = vmand %vm150_vm2, %vm156_vm3  ;;  %s2919_s17 = sshll.u32 %s3621_s16, 4  ;;  %s2920_s17 = int_to_ptr.vmem [resolvable:$true] %s2919_s17 }
  0x1a   :  { %3059 = vmatprep.subr.mxu0 %v53_v25  ;;  %3219 = vmatprep.subr.mxu1 %v206_v60  ;;  %vm154_vm8 = vmxor %vm152_vm5, %vm3606_vm4  ;;  %p3588_p1 = scmp.lt.s32.totalorder %s2920_s17, %s2920_s17 }
  0x1b   :  { %3060 = vmatpush3.msra.mxu0 %v37_v26  ;;  %3220 = vmatpush3.msra.mxu1 %v206_v60  ;;  %vm158_vm9 = vmor %vm155_vm6, %vm157_vm7 }
  0x1c   :  { %3061 = vmatprep.subr.mxu0 %v52_v27  ;;  %3221 = vmatprep.subr.mxu1 %v205_v61  ;;  %vm153_vm10 = vmxor %vm150_vm2, %vm3606_vm4  ;;  %vm1138_vm2 = vcmask 261312  }
  0x1d   :  { %3062 = vmatpush3.msra.mxu0 %v36_v28  ;;  %3222 = vmatpush3.msra.mxu1 %v205_v61  ;;  %vm160_vm11 = vmand %vm154_vm8, %vm158_vm9 }
  0x1e   :  { %3063 = vmatprep.subr.mxu0 %v51_v29  ;;  %vm159_vm12 = vmand %vm153_vm10, %vm158_vm9  ;;  %v3829_v22 = vsel %vm160_vm11, 0.0, %v3607_v21 }
  0x1f   :  { %3064 = vmatpush3.msra.mxu0 %v35_v30  ;;  %v3831_v25 = vsel %vm159_vm12, 0.0, %v3607_v21 }
  0x20   :  { %3065 = vmatprep.subr.mxu0 %v50_v31 }
  0x21   :  { %3066 = vmatpush3.msra.mxu0 %v34_v32 }
  0x22   :  { %133 = vmatmul.mubr.f32.vlgmr.msra.gmra.mxu0 %v30_v33 }
  0x23   :  { %137 = vmatprep.mubr.f32.mxu0 %v33_v34 }
  0x26   :  { %138 = vmatmul.mubr.f32.gmra.mxu0 %v32_v35 }
  0xe2   :  { %v3067_v36 = vpop.f32.mrf.mxu0 }
  0xe4   :  { %v3068_v38 = vpop.f32.mrf.mxu0 }
  0xe5   :  { %v3069_v39 = vadd.f32 %v3068_v38, %v3067_v36 }
  0xe6   :  { %v3070_v40 = vpop.f32.mrf.mxu0 }
  0xe7   :  { %v3778_v41 = vadd.f32 %v3069_v39, %v66_v37 }
  0xe8   :  { %v3071_v43 = vpop.f32.mrf.mxu0 }
  0xe9   :  { %v3072_v44 = vadd.f32 %v3071_v43, %v3070_v40  ;;  %v166_v45 = vsel %vm165_vm0, %v3778_v41, 0.0 }
  0xea   :  { %167 = vadd.xlane.f32.xlu0 %v166_v45 }
  0xeb   :  { %v3785_v46 = vadd.f32 %v3072_v44, %v67_v42 }
  0xed   :  { %v169_v47 = vsel %vm165_vm0, %v3785_v46, 0.0 }
  0xee   :  { %170 = vadd.xlane.f32.xlu0 %v169_v47 }
 0x173   :  { %v168_v48 = vpop.xlane.xlu0 %167 }
 0x174   :  { %v173_v49 = vmul.f32 0.03125, %v168_v48 }
 0x176   :  { %v175_v50 = vsub.f32 %v3778_v41, %v173_v49 }
 0x177   :  { %v171_v51 = vpop.xlane.xlu0 %170 }
 0x178   :  { %v174_v52 = vmul.f32 0.03125, %v171_v51  ;;  %v177_v53 = vmul.f32 %v175_v50, %v175_v50 }
 0x17a   :  { %v176_v54 = vsub.f32 %v3785_v46, %v174_v52  ;;  %v179_v55 = vsel %vm165_vm0, %v177_v53, 0.0 }
 0x17b   :  { %180 = vadd.xlane.f32.xlu1 %v179_v55 }
 0x17c   :  { %v178_v56 = vmul.f32 %v176_v54, %v176_v54 }
 0x17e   :  { %v182_v57 = vsel %vm165_vm0, %v178_v56, 0.0 }
 0x17f   :  { %183 = vadd.xlane.f32.xlu1 %v182_v57 }
 0x204   :  { %v181_v62 = vpop.xlane.xlu1 %180 }
 0x205   :  { %v185_v63 = vmul.f32 0.03125, %v181_v62 }
 0x207   :  { %v187_v0 = vadd.f32 1e-05, %v185_v63 }
 0x208   :  { %v184_v1 = vpop.xlane.xlu1 %183 }
 0x209   :  { %3491 = vrsqrt.f32 %v187_v0  ;;  %v186_v2 = vmul.f32 0.03125, %v184_v1 }
 0x20b   :  { %v188_v3 = vadd.f32 1e-05, %v186_v2 }
 0x20d   :  { %3493 = vrsqrt.f32 %v188_v3 }
 0x216   :  { %v3492_v4 = vpop.eup %3491 }
 0x217   :  { %v191_v6 = vmul.f32 %v3492_v4, %v175_v50 }
 0x219   :  { %v197_v8 = vmul.f32 %v2927_v5, %v191_v6 }
 0x21a   :  { %v3494_v9 = vpop.eup %3493 }
 0x21b   :  { %v192_v10 = vmul.f32 %v3494_v9, %v176_v54  ;;  %v203_v11 = vadd.f32 %v2928_v7, %v197_v8 }
 0x21d   :  { %v198_v12 = vmul.f32 %v2927_v5, %v192_v10  ;;  %3223 = vmatprep.mubr.msk.f32.mxu1 %vm165_vm0, %v203_v11 }
 0x21f   :  { %v204_v13 = vadd.f32 %v2928_v7, %v198_v12 }
 0x221   :  { %3224 = vmatmul.mubr.msk.f32.vlgmr.msra.gmra.mxu1 %vm165_vm0, %v204_v13 }
 0x2e1   :  { %v3813_v14 = vpop.f32.mrf.mxu1 }
 0x2e2   :  { %294 = vrot.lane.b32.xlu0 %v3813_v14, %s3605_s25 }
 0x2e3   :  { %v3817_v15 = vpop.f32.mrf.mxu1 }
 0x2e4   :  { %292 = vrot.lane.b32.xlu1 %v3817_v15, %s3605_s25  ;;  %3230 = vmatprep.mubr.msk.f32.mxu1 %vm296_vm1, %v3817_v15 }
 0x354   :  { %v295_v16 = vpop.permute.xlu0 %294 }
 0x355   :  { %3226 = vmatprep.subr.msk.mxu1 %vm296_vm1, %v295_v16 }
 0x356   :  { %3227 = vmatpush3.xpose.msk.msra.mxu1 %vm296_vm1, %v295_v16  ;;  %v293_v17 = vpop.permute.xlu1 %292 }
 0x357   :  { %3228 = vmatprep.subr.msk.mxu1 %vm296_vm1, %v293_v17 }
 0x35a   :  { %3229 = vmatpush3.xpose.msk.msra.mxu1 %vm296_vm1, %v293_v17 }
 0x35d   :  { %3231 = vmatmul.mubr.msk.f32.vlgmr.msra.gmra.mxu1 %vm296_vm1, %v3813_v14 }
 0x41d   :  { %v3232_v20 = vpop.f32.mrf.mxu1 }
 0x41e   :  { %v381_v23 = vmul.f32 0.35355338, %v3232_v20 }
 0x41f   :  { %v371_v24 = vpop.f32.mrf.mxu1 }
 0x420   :  { %v380_v26 = vmul.f32 0.35355338, %v371_v24  ;;  %v383_v27 = vadd.f32 %v381_v23, %v3829_v22 }
 0x422   :  { %v388_v28 = vsel %vm384_vm13, %v383_v27, -inf  ;;  %v382_v29 = vadd.f32 %v380_v26, %v3831_v25 }
 0x423   :  { %389 = vmax.xlane.f32.xlu0 %v388_v28 }
 0x424   :  { %v385_v30 = vsel %vm384_vm13, %v382_v29, -inf }
 0x425   :  { %386 = vmax.xlane.f32.xlu1 %v385_v30 }
 0x436   :  { %407 = vrot.lane.b32.xlu1 %v3817_v15, %s3608_s26 }
 0x439   :  { %409 = vrot.lane.b32.xlu0 %v3813_v14, %s3608_s26 }
 0x43a   :  { %502 = vrot.lane.b32.xlu1 %v3813_v14, %s3609_s27 }
 0x43e   :  { %500 = vrot.lane.b32.xlu1 %v3817_v15, %s3609_s27 }
 0x4ac   :  { %v390_v31 = vpop.xlane.xlu0 %389 }
 0x4ad   :  { %v392_v32 = vsub.f32 %v383_v27, %v390_v31 }
 0x4ae   :  { %v387_v33 = vpop.xlane.xlu1 %386 }
 0x4af   :  { %v395_v34 = vmul.f32 1.442695, %v392_v32  ;;  %v391_v35 = vsub.f32 %v382_v29, %v387_v33 }
 0x4b0   :  { %v410_v36 = vpop.permute.xlu0 %409 }
 0x4b1   :  { %3495 = vpow2.f32 %v395_v34  ;;  %v393_v37 = vmul.f32 1.442695, %v391_v35  ;;  %3233 = vmatprep.subr.mxu1 %v410_v36 }
 0x4b2   :  { %3234 = vmatpush3.msra.mxu1 %v410_v36  ;;  %v408_v38 = vpop.permute.xlu1 %407 }
 0x4b3   :  { %3497 = vpow2.f32 %v393_v37  ;;  %3235 = vmatprep.subr.mxu1 %v408_v38 }
 0x4b4   :  { %3236 = vmatpush3.msra.mxu1 %v408_v38 }
 0x4b6   :  { %v503_v39 = vpop.permute.xlu1 %502 }
 0x4b7   :  { %3240 = vmatprep.subr.msk.mxu1 %vm296_vm1, %v503_v39 }
 0x4ba   :  { %v501_v45 = vpop.permute.xlu1 %500 }
 0x4be   :  { %v3496_v40 = vpop.eup %3495 }
 0x4bf   :  { %v400_v42 = vsel %vm384_vm13, %v3496_v40, 0.0 }
 0x4c0   :  { %v3498_v43 = vpop.eup %3497  ;;  %401 = vadd.xlane.f32.xlu1 %v400_v42 }
 0x4c1   :  { %v397_v44 = vsel %vm384_vm13, %v3498_v43, 0.0 }
 0x4c2   :  { %398 = vadd.xlane.f32.xlu0 %v397_v44 }
 0x4d1   :  { %496 = vrot.lane.b32.xlu1 %v3817_v15, %s3610_s28 }
 0x4d5   :  { %715 = vrot.lane.b32.xlu1 %v3817_v15, %s3611_s29 }
 0x4d8   :  { %717 = vrot.lane.b32.xlu0 %v3813_v14, %s3611_s29 }
 0x4d9   :  { %713 = vrot.lane.b32.xlu1 %v3813_v14, %s3612_s30 }
 0x4dc   :  { %498 = vrot.lane.b32.xlu0 %v3813_v14, %s3610_s28 }
 0x4e0   :  { %711 = vrot.lane.b32.xlu0 %v3817_v15, %s3612_s30 }
 0x549   :  { %v402_v47 = vpop.xlane.xlu1 %401 }
 0x54a   :  { %3499 = vrcp.f32 %v402_v47 }
 0x54b   :  { %v399_v48 = vpop.xlane.xlu0 %398 }
 0x54c   :  { %3501 = vrcp.f32 %v399_v48 }
 0x54d   :  { %v497_v49 = vpop.permute.xlu1 %496 }
 0x54f   :  { %v718_v50 = vpop.permute.xlu0 %717 }
 0x550   :  { %3254 = vmatprep.subr.msk.mxu0 %vm296_vm1, %v718_v50 }
 0x551   :  { %3255 = vmatpush3.xpose.msk.msra.mxu0 %vm296_vm1, %v718_v50  ;;  %v716_v51 = vpop.permute.xlu1 %715 }
 0x552   :  { %3256 = vmatprep.subr.msk.mxu0 %vm296_vm1, %v716_v51 }
 0x553   :  { %v499_v52 = vpop.permute.xlu0 %498 }
 0x555   :  { %3257 = vmatpush3.xpose.msk.msra.mxu0 %vm296_vm1, %v716_v51  ;;  %v714_v55 = vpop.permute.xlu1 %713 }
 0x557   :  { %v712_v53 = vpop.permute.xlu0 %711  ;;  %v3500_v54 = vpop.eup %3499 }
 0x558   :  { %3258 = vmatprep.mubr.msk.f32.mxu0 %vm296_vm1, %v712_v53  ;;  %v406_v58 = vmul.f32 %v3500_v54, %v3496_v40 }
 0x559   :  { %v3502_v56 = vpop.eup %3501  ;;  %3259 = vmatmul.mubr.msk.f32.vlgmr.msra.gmra.mxu0 %vm296_vm1, %v714_v55 }
 0x55a   :  { %v404_v57 = vmul.f32 %v3502_v56, %v3498_v43 }
 0x55c   :  { %3237 = vmatprep.mubr.msk.f32.mxu1 %vm384_vm13, %v404_v57 }
 0x55d   :  { %3238 = vmatmul.mubr.msk.f32.vlgmr.msra.gmra.mxu1 %vm384_vm13, %v406_v58 }
 0x55e   :  { %3241 = vmatpush3.xpose.msk.msra.mxu1 %vm296_vm1, %v503_v39  ;;  %3244 = vmatprep.mubr.msk.f32.mxu1 %vm296_vm1, %v497_v49 }
 0x55f   :  { %3242 = vmatprep.subr.msk.mxu1 %vm296_vm1, %v501_v45 }
 0x562   :  { %3243 = vmatpush3.xpose.msk.msra.mxu1 %vm296_vm1, %v501_v45 }
 0x565   :  { %3245 = vmatmul.mubr.msk.f32.vlgmr.msra.gmra.mxu1 %vm296_vm1, %v499_v52 }
 0x619   :  { %v3260_v61 = vpop.f32.mrf.mxu0 }
 0x61a   :  { %v803_v7 = vmul.f32 0.35355338, %v3260_v61 }
 0x61b   :  { %v793_v62 = vpop.f32.mrf.mxu0 }
 0x61c   :  { %v802_v2 = vmul.f32 0.35355338, %v793_v62  ;;  %v805_v11 = vadd.f32 %v803_v7, %v3829_v22 }
 0x61d   :  { %v3239_v59 = vpop.f32.mrf.mxu1 }
 0x61e   :  { %495 = vst.msk [vmem:[#allocation2 + $0x8] sm:$0xff] %vm296_vm1, %v3239_v59  ;;  %v804_v9 = vadd.f32 %v802_v2, %v3831_v25  ;;  %v809_v12 = vsel %vm384_vm13, %v805_v11, -inf }
 0x61f   :  { %v485_v60 = vpop.f32.mrf.mxu1 }
 0x620   :  { %494 = vst.msk [vmem:[#allocation2] sm:$0xff] %vm296_vm1, %v485_v60  ;;  %v806_v10 = vsel %vm384_vm13, %v804_v9, -inf }
 0x625   :  { %v3246_v63 = vpop.f32.mrf.mxu1 }
 0x626   :  { %v588_v0 = vmul.f32 0.35355338, %v3246_v63 }
 0x627   :  { %v578_v1 = vpop.f32.mrf.mxu1 }
 0x628   :  { %v587_v3 = vmul.f32 0.35355338, %v578_v1  ;;  %v590_v4 = vadd.f32 %v588_v0, %v3829_v22 }
 0x62a   :  { %v594_v5 = vsel %vm384_vm13, %v590_v4, -inf  ;;  %v589_v6 = vadd.f32 %v587_v3, %v3831_v25 }
 0x62b   :  { %595 = vmax.xlane.f32.xlu1 %v594_v5 }
 0x62c   :  { %v591_v8 = vsel %vm384_vm13, %v589_v6, -inf }
 0x62d   :  { %592 = vmax.xlane.f32.xlu0 %v591_v8 }
 0x631   :  { %807 = vmax.xlane.f32.xlu0 %v806_v10 }
 0x635   :  { %810 = vmax.xlane.f32.xlu0 %v809_v12 }
 0x6b4   :  { %v596_v17 = vpop.xlane.xlu1 %595 }
 0x6b5   :  { %v598_v20 = vsub.f32 %v590_v4, %v596_v17 }
 0x6b6   :  { %v593_v13 = vpop.xlane.xlu0 %592 }
 0x6b7   :  { %v597_v16 = vsub.f32 %v589_v6, %v593_v13  ;;  %v601_v27 = vmul.f32 1.442695, %v598_v20 }
 0x6b9   :  { %v599_v21 = vmul.f32 1.442695, %v597_v16 }
 0x6ba   :  { %v808_v18 = vpop.xlane.xlu0 %807 }
 0x6bb   :  { %v812_v19 = vsub.f32 %v804_v9, %v808_v18 }
 0x6bd   :  { %v814_v23 = vmul.f32 1.442695, %v812_v19 }
 0x6be   :  { %v811_v24 = vpop.xlane.xlu0 %810 }
 0x6bf   :  { %3503 = vpow2.f32 %v814_v23  ;;  %v813_v26 = vsub.f32 %v805_v11, %v811_v24 }
 0x6c0   :  { %3505 = vpow2.f32 %v599_v21 }
 0x6c1   :  { %v816_v28 = vmul.f32 1.442695, %v813_v26 }
 0x6c3   :  { %3507 = vpow2.f32 %v816_v28 }
 0x6c4   :  { %3509 = vpow2.f32 %v601_v27 }
 0x6cc   :  { %v3504_v29 = vpop.eup %3503 }
 0x6cd   :  { %v818_v30 = vsel %vm384_vm13, %v3504_v29, 0.0  ;;  %v3506_v31 = vpop.eup %3505 }
 0x6ce   :  { %819 = vadd.xlane.f32.xlu0 %v818_v30  ;;  %v603_v33 = vsel %vm384_vm13, %v3506_v31, 0.0 }
 0x6d0   :  { %v3508_v32 = vpop.eup %3507 }
 0x6d1   :  { %v821_v34 = vsel %vm384_vm13, %v3508_v32, 0.0  ;;  %v3510_v35 = vpop.eup %3509 }
 0x6d2   :  { %604 = vadd.xlane.f32.xlu0 %v603_v33  ;;  %822 = vadd.xlane.f32.xlu1 %v821_v34  ;;  %v606_v36 = vsel %vm384_vm13, %v3510_v35, 0.0  ;;  %v1145_v33 = vld [vmem:[%s4337_s4 + $0x8] sm:$0xff]  ;;  %v1144_v34 = vld [vmem:[%s4337_s4] sm:$0xff] }
 0x6d6   :  { %607 = vadd.xlane.f32.xlu1 %v606_v36 }
 0x6e7   :  { %613 = vrot.lane.b32.xlu1 %v3817_v15, %s3613_s9 }
 0x6e8   :  { %615 = vrot.lane.b32.xlu0 %v3813_v14, %s3613_s9 }
 0x6eb   :  { %830 = vrot.lane.b32.xlu1 %v3813_v14, %s3614_s10 }
 0x6ec   :  { %932 = vrot.lane.b32.xlu0 %v3813_v14, %s3615_s1 }
 0x6ef   :  { %828 = vrot.lane.b32.xlu1 %v3817_v15, %s3614_s10 }
 0x6f0   :  { %926 = vrot.lane.b32.xlu0 %v3817_v15, %s3616_s11 }
 0x6f3   :  { %930 = vrot.lane.b32.xlu1 %v3817_v15, %s3615_s1 }
 0x6f7   :  { %928 = vrot.lane.b32.xlu1 %v3813_v14, %s3616_s11 }
 0x757   :  { %v820_v37 = vpop.xlane.xlu0 %819 }
 0x75b   :  { %v605_v38 = vpop.xlane.xlu0 %604  ;;  %v823_v39 = vpop.xlane.xlu1 %822 }
 0x75c   :  { %3511 = vrcp.f32 %v605_v38 }
 0x75d   :  { %3513 = vrcp.f32 %v820_v37 }
 0x75f   :  { %v616_v40 = vpop.permute.xlu0 %615  ;;  %v608_v42 = vpop.xlane.xlu1 %607 }
 0x760   :  { %3515 = vrcp.f32 %v608_v42  ;;  %3247 = vmatprep.subr.mxu1 %v616_v40  ;;  %v2955_v42 = vld [vmem:[%s4335_s2 + $0x18] ss:$0 sm:$0xff] }
 0x761   :  { %3248 = vmatpush3.msra.mxu1 %v616_v40  ;;  %3517 = vrcp.f32 %v823_v39 }
 0x763   :  { %v614_v43 = vpop.permute.xlu1 %613  ;;  %v933_v50 = vpop.permute.xlu0 %932 }
 0x764   :  { %3249 = vmatprep.subr.mxu1 %v614_v43 }
 0x765   :  { %3250 = vmatpush3.msra.mxu1 %v614_v43 }
 0x767   :  { %v831_v44 = vpop.permute.xlu1 %830  ;;  %v927_v56 = vpop.permute.xlu0 %926 }
 0x768   :  { %3261 = vmatprep.subr.mxu1 %v831_v44 }
 0x769   :  { %v3512_v45 = vpop.eup %3511 }
 0x76a   :  { %v610_v47 = vmul.f32 %v3512_v45, %v3506_v31  ;;  %v3514_v48 = vpop.eup %3513 }
 0x76b   :  { %v829_v53 = vpop.permute.xlu1 %828  ;;  %v825_v54 = vmul.f32 %v3514_v48, %v3504_v29 }
 0x76c   :  { %3251 = vmatprep.mubr.msk.f32.mxu1 %vm384_vm13, %v610_v47 }
 0x76d   :  { %v3516_v49 = vpop.eup %3515 }
 0x76e   :  { %v612_v51 = vmul.f32 %v3516_v49, %v3510_v35  ;;  %v3518_v52 = vpop.eup %3517 }
 0x76f   :  { %v827_v55 = vmul.f32 %v3518_v52, %v3508_v32  ;;  %v931_v57 = vpop.permute.xlu1 %930  ;;  %v1146_v32 = vld [vmem:[%s4337_s4 + $0x10] sm:$0xff] }
 0x770   :  { %3252 = vmatmul.mubr.msk.f32.vlgmr.msra.gmra.mxu1 %vm384_vm13, %v612_v51 }
 0x771   :  { %3262 = vmatpush3.msra.mxu1 %v831_v44  ;;  %3265 = vmatprep.mubr.msk.f32.mxu1 %vm384_vm13, %v825_v54 }
 0x772   :  { %3263 = vmatprep.subr.mxu1 %v829_v53 }
 0x773   :  { %3264 = vmatpush3.msra.mxu1 %v829_v53  ;;  %v929_v58 = vpop.permute.xlu1 %928 }
 0x774   :  { %3268 = vmatprep.subr.msk.mxu1 %vm296_vm1, %v933_v50  ;;  %3266 = vmatmul.mubr.msk.f32.vlgmr.msra.gmra.mxu1 %vm384_vm13, %v827_v55 }
 0x775   :  { %3269 = vmatpush3.xpose.msk.msra.mxu1 %vm296_vm1, %v933_v50  ;;  %3272 = vmatprep.mubr.msk.f32.mxu1 %vm296_vm1, %v927_v56 }
 0x776   :  { %3270 = vmatprep.subr.msk.mxu1 %vm296_vm1, %v931_v57 }
 0x779   :  { %3271 = vmatpush3.xpose.msk.msra.mxu1 %vm296_vm1, %v931_v57 }
 0x77c   :  { %3273 = vmatmul.mubr.msk.f32.vlgmr.msra.gmra.mxu1 %vm296_vm1, %v929_v58 }
 0x830   :  { %v3253_v59 = vpop.f32.mrf.mxu1 }
 0x832   :  { %v691_v60 = vpop.f32.mrf.mxu1 }
 0x834   :  { %v3267_v61 = vpop.f32.mrf.mxu1 }
 0x836   :  { %v906_v62 = vpop.f32.mrf.mxu1 }
 0x83c   :  { %v3274_v63 = vpop.f32.mrf.mxu1 }
 0x83d   :  { %v1018_v0 = vmul.f32 0.35355338, %v3274_v63  ;;  %v1275_v63 = vld [vmem:[%s4338_s5] sm:$0xff] }
 0x83e   :  { %v1008_v1 = vpop.f32.mrf.mxu1 }
 0x83f   :  { %v1017_v2 = vmul.f32 0.35355338, %v1008_v1  ;;  %v1020_v3 = vadd.f32 %v1018_v0, %v3829_v22  ;;  %v1390_v0 = vld [vmem:[%s4339_s6 + $0x78] sm:$0xff]  ;;  %v1389_v1 = vld [vmem:[%s4339_s6 + $0x70] sm:$0xff] }
 0x840   :  { %3304 = vmatprep.subr.mxu0 %v1390_v0 }
 0x841   :  { %v1024_v4 = vsel %vm384_vm13, %v1020_v3, -inf  ;;  %v1019_v5 = vadd.f32 %v1017_v2, %v3831_v25  ;;  %3305 = vmatpush3.msra.mxu0 %v1390_v0  ;;  %v1388_v2 = vld [vmem:[%s4339_s6 + $0x68] sm:$0xff] }
 0x842   :  { %1025 = vmax.xlane.f32.xlu1 %v1024_v4  ;;  %3306 = vmatprep.subr.mxu0 %v1389_v1 }
 0x843   :  { %v1021_v6 = vsel %vm384_vm13, %v1019_v5, -inf  ;;  %3307 = vmatpush3.msra.mxu0 %v1389_v1 }
 0x844   :  { %1022 = vmax.xlane.f32.xlu0 %v1021_v6  ;;  %3308 = vmatprep.subr.mxu0 %v1388_v2 }
 0x845   :  { %3309 = vmatpush3.msra.mxu0 %v1388_v2 }
 0x853   :  { %1043 = vrot.lane.b32.xlu1 %v3817_v15, %s3617_s12 }
 0x857   :  { %702 = vrot.lane.b32.xlu1 %v691_v60, %s3618_s13  ;;  %v1278_v60 = vld [vmem:[%s4338_s5 + $0x18] sm:$0xff] }
 0x85b   :  { %704 = vrot.lane.b32.xlu1 %v3253_v59, %s3618_s13 }
 0x85f   :  { %919 = vrot.lane.b32.xlu1 %v3267_v61, %s3619_s0  ;;  %v1277_v61 = vld [vmem:[%s4338_s5 + $0x10] sm:$0xff] }
 0x8cb   :  { %v1026_v7 = vpop.xlane.xlu1 %1025 }
 0x8cc   :  { %v1028_v8 = vsub.f32 %v1020_v3, %v1026_v7 }
 0x8cd   :  { %v1023_v9 = vpop.xlane.xlu0 %1022 }
 0x8ce   :  { %v1031_v10 = vmul.f32 1.442695, %v1028_v8  ;;  %v1027_v11 = vsub.f32 %v1019_v5, %v1023_v9 }
 0x8cf   :  { %v1044_v12 = vpop.permute.xlu1 %1043 }
 0x8d0   :  { %3519 = vpow2.f32 %v1031_v10  ;;  %v1029_v13 = vmul.f32 1.442695, %v1027_v11  ;;  %v2958_v10 = vld [vmem:[%s4335_s2 + $0x14] ss:$0 sm:$0xff] }
 0x8d2   :  { %3521 = vpow2.f32 %v1029_v13 }
 0x8d3   :  { %v703_v16 = vpop.permute.xlu1 %702 }
 0x8d4   :  { %709 = vst.msk [vmem:[#allocation2] sm:$0xff] %vm708_vm14, %v703_v16 }
 0x8d7   :  { %v705_v15 = vpop.permute.xlu1 %704 }
 0x8d8   :  { %710 = vst.msk [vmem:[#allocation2 + $0x8] sm:$0xff] %vm708_vm14, %v705_v15 }
 0x8db   :  { %v920_v17 = vpop.permute.xlu1 %919 }
 0x8dc   :  { %925 = vst.msk [vmem:[#allocation2 + $0x8] sm:$0xff] %vm923_vm15, %v920_v17 }
 0x8dd   :  { %v3520_v18 = vpop.eup %3519 }
 0x8de   :  { %v1036_v19 = vsel %vm384_vm13, %v3520_v18, 0.0 }
 0x8df   :  { %v3522_v20 = vpop.eup %3521  ;;  %1037 = vadd.xlane.f32.xlu0 %v1036_v19 }
 0x8e0   :  { %v1033_v21 = vsel %vm384_vm13, %v3522_v20, 0.0 }
 0x8e3   :  { %1034 = vadd.xlane.f32.xlu0 %v1033_v21  ;;  %v1386_v21 = vld [vmem:[%s4339_s6 + $0x58] sm:$0xff] }
 0x8f9   :  { %1045 = vrot.lane.b32.xlu0 %v3813_v14, %s3617_s12  ;;  %v1147_v14 = vld [vmem:[%s4337_s4 + $0x18] sm:$0xff] }
 0x8fd   :  { %917 = vrot.lane.b32.xlu0 %v906_v62, %s3619_s0  ;;  %v1276_v62 = vld [vmem:[%s4338_s5 + $0x8] sm:$0xff] }
 0x968   :  { %v1038_v23 = vpop.xlane.xlu0 %1037 }
 0x969   :  { %3523 = vrcp.f32 %v1038_v23  ;;  %v1385_v23 = vld [vmem:[%s4339_s6 + $0x50] sm:$0xff] }
 0x96c   :  { %v1035_v24 = vpop.xlane.xlu0 %1034 }
 0x96d   :  { %3525 = vrcp.f32 %v1035_v24  ;;  %v1384_v24 = vld [vmem:[%s4339_s6 + $0x48] sm:$0xff] }
 0x970   :  { %v1046_v26 = vpop.permute.xlu0 %1045 }
 0x971   :  { %3275 = vmatprep.subr.mxu1 %v1046_v26 }
 0x972   :  { %3276 = vmatpush3.msra.mxu1 %v1046_v26  ;;  %v1383_v26 = vld [vmem:[%s4339_s6 + $0x40] sm:$0xff] }
 0x973   :  { %3277 = vmatprep.subr.mxu1 %v1044_v12 }
 0x974   :  { %3278 = vmatpush3.msra.mxu1 %v1044_v12  ;;  %v918_v27 = vpop.permute.xlu0 %917  ;;  %v2959_v12 = vld [vmem:[%s4335_s2 + $0x16] ss:$0 sm:$0xff] }
 0x975   :  { %924 = vst.msk [vmem:[#allocation2] sm:$0xff] %vm923_vm15, %v918_v27  ;;  %3282 = vmatprep.subr.mxu1 %v1147_v14  ;;  %v1382_v27 = vld [vmem:[%s4339_s6 + $0x38] sm:$0xff] }
 0x976   :  { %v3524_v28 = vpop.eup %3523 }
 0x977   :  { %v1042_v31 = vmul.f32 %v3524_v28, %v3520_v18  ;;  %v1381_v28 = vld [vmem:[%s4339_s6 + $0x30] sm:$0xff] }
 0x97a   :  { %v3526_v29 = vpop.eup %3525 }
 0x97b   :  { %v1040_v30 = vmul.f32 %v3526_v29, %v3522_v20  ;;  %v1387_v20 = vld [vmem:[%s4339_s6 + $0x60] sm:$0xff]  ;;  %v1380_v29 = vld [vmem:[%s4339_s6 + $0x28] sm:$0xff] }
 0x97c   :  { %3310 = vmatprep.subr.mxu0 %v1387_v20 }
 0x97d   :  { %3279 = vmatprep.mubr.msk.f32.mxu1 %vm384_vm13, %v1040_v30  ;;  %3311 = vmatpush3.msra.mxu0 %v1387_v20  ;;  %v1379_v30 = vld [vmem:[%s4339_s6 + $0x20] sm:$0xff] }
 0x97e   :  { %3280 = vmatmul.mubr.msk.f32.vlgmr.msra.gmra.mxu1 %vm384_vm13, %v1042_v31  ;;  %3312 = vmatprep.subr.mxu0 %v1386_v21  ;;  %v1378_v31 = vld [vmem:[%s4339_s6 + $0x18] sm:$0xff] }
 0x97f   :  { %3283 = vmatpush3.msra.mxu1 %v1147_v14  ;;  %3313 = vmatpush3.msra.mxu0 %v1386_v21  ;;  %v1377_v14 = vld [vmem:[%s4339_s6 + $0x10] sm:$0xff] }
 0x980   :  { %3284 = vmatprep.subr.mxu1 %v1146_v32  ;;  %3314 = vmatprep.subr.mxu0 %v1385_v23  ;;  %v2965_v21 = vld [vmem:[%s4335_s2 + $0x13] ss:$0 sm:$0xff] }
 0x981   :  { %3285 = vmatpush3.msra.mxu1 %v1146_v32  ;;  %3315 = vmatpush3.msra.mxu0 %v1385_v23  ;;  %v1376_v32 = vld [vmem:[%s4339_s6 + $0x8] sm:$0xff] }
 0x982   :  { %3286 = vmatprep.subr.mxu1 %v1145_v33  ;;  %3316 = vmatprep.subr.mxu0 %v1384_v24 }
 0x983   :  { %3287 = vmatpush3.msra.mxu1 %v1145_v33  ;;  %3317 = vmatpush3.msra.mxu0 %v1384_v24  ;;  %v1375_v33 = vld [vmem:[%s4339_s6] sm:$0xff] }
 0x984   :  { %3288 = vmatprep.subr.mxu1 %v1144_v34  ;;  %3318 = vmatprep.subr.mxu0 %v1383_v26 }
 0x985   :  { %3289 = vmatpush3.msra.mxu1 %v1144_v34  ;;  %3319 = vmatpush3.msra.mxu0 %v1383_v26  ;;  %v2960_v34 = vld [vmem:[%s4338_s5 + $0x20] ss:$0 sm:$0xff] }
 0x986   :  { %3293 = vmatprep.subr.mxu1 %v1278_v60  ;;  %3320 = vmatprep.subr.mxu0 %v1382_v27 }
 0x987   :  { %3321 = vmatpush3.msra.mxu0 %v1382_v27 }
 0x988   :  { %3322 = vmatprep.subr.mxu0 %v1381_v28 }
 0x989   :  { %3323 = vmatpush3.msra.mxu0 %v1381_v28 }
 0x98a   :  { %3324 = vmatprep.subr.mxu0 %v1380_v29 }
 0x98b   :  { %3325 = vmatpush3.msra.mxu0 %v1380_v29 }
 0x98c   :  { %3326 = vmatprep.subr.mxu0 %v1379_v30 }
 0x98d   :  { %3327 = vmatpush3.msra.mxu0 %v1379_v30 }
 0x98e   :  { %3328 = vmatprep.subr.mxu0 %v1378_v31 }
 0x98f   :  { %3329 = vmatpush3.msra.mxu0 %v1378_v31 }
 0x990   :  { %3330 = vmatprep.subr.mxu0 %v1377_v14 }
 0x991   :  { %3331 = vmatpush3.msra.mxu0 %v1377_v14 }
 0x992   :  { %3332 = vmatprep.subr.mxu0 %v1376_v32 }
 0x993   :  { %3333 = vmatpush3.msra.mxu0 %v1376_v32 }
 0x994   :  { %3334 = vmatprep.subr.mxu0 %v1375_v33 }
 0x995   :  { %3335 = vmatpush3.msra.mxu0 %v1375_v33 }
 0xa3e   :  { %v3281_v35 = vpop.f32.mrf.mxu1 }
 0xa3f   :  { %1134 = vrot.lane.b32.xlu1 %v3281_v35, %s3620_s22 }
 0xa40   :  { %v1121_v36 = vpop.f32.mrf.mxu1 }
 0xa41   :  { %1132 = vrot.lane.b32.xlu0 %v1121_v36, %s3620_s22 }
 0xab1   :  { %v1135_v37 = vpop.permute.xlu1 %1134 }
 0xab2   :  { %1140 = vst.msk [vmem:[#allocation2 + $0x8] sm:$0xff] %vm1138_vm2, %v1135_v37 }
 0xab3   :  { %v1133_v38 = vpop.permute.xlu0 %1132 }
 0xab4   :  { %1139 = vst.msk [vmem:[#allocation2] sm:$0xff] %vm1138_vm2, %v1133_v38 }
 0xab9   :  { %v1143_v40 = vld [vmem:[#allocation2 + $0x8] sm:$0xff] }
 0xabb   :  { %v1142_v39 = vld [vmem:[#allocation2] sm:$0xff] }
 0xabc   :  { %3290 = vmatprep.mubr.msk.f32.mxu1 %vm165_vm0, %v1142_v39 }
 0xabd   :  { %3291 = vmatmul.mubr.msk.f32.vlgmr.msra.gmra.mxu1 %vm165_vm0, %v1143_v40 }
 0xabe   :  { %3294 = vmatpush3.msra.mxu1 %v1278_v60 }
 0xabf   :  { %3295 = vmatprep.subr.mxu1 %v1277_v61 }
 0xac0   :  { %3296 = vmatpush3.msra.mxu1 %v1277_v61 }
 0xac1   :  { %3297 = vmatprep.subr.mxu1 %v1276_v62 }
 0xac2   :  { %3298 = vmatpush3.msra.mxu1 %v1276_v62 }
 0xac3   :  { %3299 = vmatprep.subr.mxu1 %v1275_v63 }
 0xac4   :  { %3300 = vmatpush3.msra.mxu1 %v1275_v63 }
 0xb7d   :  { %v3292_v43 = vpop.f32.mrf.mxu1 }
 0xb7e   :  { %v1230_v44 = vadd.f32 %v3292_v43, %v2955_v42 }
 0xb7f   :  { %v1224_v45 = vpop.f32.mrf.mxu1 }
 0xb80   :  { %v3955_v47 = vadd.f32 %v1230_v44, %v3785_v46  ;;  %v1225_v48 = vadd.f32 %v2955_v42, %v1224_v45 }
 0xb82   :  { %v3958_v49 = vadd.f32 %v1225_v48, %v3778_v41  ;;  %v1240_v50 = vsel %vm165_vm0, %v3955_v47, 0.0 }
 0xb83   :  { %1241 = vadd.xlane.f32.xlu1 %v1240_v50 }
 0xb84   :  { %v1237_v51 = vsel %vm165_vm0, %v3958_v49, 0.0 }
 0xb85   :  { %1238 = vadd.xlane.f32.xlu0 %v1237_v51 }
 0xc0c   :  { %v1242_v52 = vpop.xlane.xlu1 %1241 }
 0xc0d   :  { %v1244_v53 = vmul.f32 0.03125, %v1242_v52 }
 0xc0e   :  { %v1239_v54 = vpop.xlane.xlu0 %1238 }
 0xc0f   :  { %v1243_v55 = vmul.f32 0.03125, %v1239_v54  ;;  %v1246_v56 = vsub.f32 %v3955_v47, %v1244_v53  ;;  %v2963_v53 = vld [vmem:[%s4335_s2 + $0x1a] ss:$0 sm:$0xff] }
 0xc11   :  { %v1245_v46 = vsub.f32 %v3958_v49, %v1243_v55  ;;  %v1248_v58 = vmul.f32 %v1246_v56, %v1246_v56 }
 0xc13   :  { %v1247_v57 = vmul.f32 %v1245_v46, %v1245_v46  ;;  %v1252_v59 = vsel %vm165_vm0, %v1248_v58, 0.0 }
 0xc15   :  { %v1249_v41 = vsel %vm165_vm0, %v1247_v57, 0.0 }
 0xc16   :  { %1250 = vadd.xlane.f32.xlu0 %v1249_v41 }
 0xc1a   :  { %1253 = vadd.xlane.f32.xlu0 %v1252_v59 }
 0xc9f   :  { %v1251_v3 = vpop.xlane.xlu0 %1250 }
 0xca0   :  { %v1255_v4 = vmul.f32 0.03125, %v1251_v3 }
 0xca2   :  { %v1257_v5 = vadd.f32 1e-05, %v1255_v4  ;;  %v2969_v4 = vld [vmem:[%s4336_s3 + $0x38] sm:$0xff] }
 0xca3   :  { %v1254_v6 = vpop.xlane.xlu0 %1253  ;;  %3339 = vmatprep.subr.mxu1 %v2969_v4 }
 0xca4   :  { %3527 = vrsqrt.f32 %v1257_v5  ;;  %v1256_v7 = vmul.f32 0.03125, %v1254_v6  ;;  %v2968_v5 = vld [vmem:[%s4336_s3 + $0x30] sm:$0xff]  ;;  %v2967_v6 = vld [vmem:[%s4336_s3 + $0x28] sm:$0xff] }
 0xca6   :  { %v1258_v8 = vadd.f32 1e-05, %v1256_v7  ;;  %v2966_v7 = vld [vmem:[%s4336_s3 + $0x20] sm:$0xff] }
 0xca8   :  { %3529 = vrsqrt.f32 %v1258_v8 }
 0xcb1   :  { %v3528_v9 = vpop.eup %3527 }
 0xcb2   :  { %v1261_v11 = vmul.f32 %v3528_v9, %v1245_v46 }
 0xcb4   :  { %v1267_v13 = vmul.f32 %v2958_v10, %v1261_v11 }
 0xcb5   :  { %v3530_v16 = vpop.eup %3529 }
 0xcb6   :  { %v1262_v15 = vmul.f32 %v3530_v16, %v1246_v56  ;;  %v1273_v17 = vadd.f32 %v2959_v12, %v1267_v13 }
 0xcb8   :  { %v1268_v18 = vmul.f32 %v2958_v10, %v1262_v15  ;;  %3301 = vmatprep.mubr.msk.f32.mxu1 %vm165_vm0, %v1273_v17  ;;  %v2964_v15 = vld [vmem:[%s4335_s2 + $0x11] ss:$0 sm:$0xff] }
 0xcba   :  { %v1274_v19 = vadd.f32 %v2959_v12, %v1268_v18 }
 0xcbc   :  { %3302 = vmatmul.mubr.msk.f32.vlgmr.msra.gmra.mxu1 %vm165_vm0, %v1274_v19 }
 0xcbd   :  { %3340 = vmatpush3.msra.mxu1 %v2969_v4 }
 0xcbe   :  { %3341 = vmatprep.subr.mxu1 %v2968_v5 }
 0xcbf   :  { %3342 = vmatpush3.msra.mxu1 %v2968_v5 }
 0xcc0   :  { %3343 = vmatprep.subr.mxu1 %v2967_v6 }
 0xcc1   :  { %3344 = vmatpush3.msra.mxu1 %v2967_v6 }
 0xcc2   :  { %3345 = vmatprep.subr.mxu1 %v2966_v7 }
 0xcc3   :  { %3346 = vmatpush3.msra.mxu1 %v2966_v7 }
 0xd7c   :  { %v3303_v35 = vpop.f32.mrf.mxu1 }
 0xd7d   :  { %v1362_v36 = vadd.f32 %v3303_v35, %v2960_v34 }
 0xd7e   :  { %v1356_v37 = vpop.f32.mrf.mxu1 }
 0xd7f   :  { %v1368_v38 = vmul.f32 0.70710677, %v1362_v36  ;;  %v1357_v39 = vadd.f32 %v2960_v34, %v1356_v37  ;;  %v1366_v50 = vmul.f32 0.5, %v1362_v36 }
 0xd81   :  { %3531 = verf.f32 %v1368_v38  ;;  %v1367_v40 = vmul.f32 0.70710677, %v1357_v39  ;;  %v1365_v45 = vmul.f32 0.5, %v1357_v39 }
 0xd83   :  { %3533 = verf.f32 %v1367_v40 }
 0xd8e   :  { %v3532_v42 = vpop.eup %3531 }
 0xd8f   :  { %v1372_v44 = vadd.f32 1.0, %v3532_v42 }
 0xd90   :  { %v3534_v43 = vpop.eup %3533 }
 0xd91   :  { %v1371_v48 = vadd.f32 1.0, %v3534_v43  ;;  %v1374_v52 = vmul.f32 %v1372_v44, %v1366_v50 }
 0xd93   :  { %v1373_v51 = vmul.f32 %v1371_v48, %v1365_v45 }
 0xd95   :  { %3336 = vmatprep.mubr.f32.mxu0 %v1373_v51 }
 0xd96   :  { %3337 = vmatmul.mubr.f32.vlgmr.msra.gmra.mxu0 %v1374_v52 }
 0xe56   :  { %v3338_v54 = vpop.f32.mrf.mxu0 }
 0xe57   :  { %v1468_v55 = vadd.f32 %v3338_v54, %v2963_v53 }
 0xe58   :  { %v1462_v56 = vpop.f32.mrf.mxu0 }
 0xe59   :  { %v4043_v46 = vadd.f32 %v1468_v55, %v3955_v47  ;;  %v1463_v57 = vadd.f32 %v2963_v53, %v1462_v56 }
 0xe5b   :  { %v4046_v41 = vadd.f32 %v1463_v57, %v3958_v49  ;;  %v1478_v58 = vsel %vm165_vm0, %v4043_v46, 0.0 }
 0xe5c   :  { %1479 = vadd.xlane.f32.xlu1 %v1478_v58 }
 0xe5d   :  { %v1475_v59 = vsel %vm165_vm0, %v4046_v41, 0.0 }
 0xe5e   :  { %1476 = vadd.xlane.f32.xlu0 %v1475_v59 }
 0xee5   :  { %v1480_v60 = vpop.xlane.xlu1 %1479 }
 0xee6   :  { %v1482_v61 = vmul.f32 0.03125, %v1480_v60 }
 0xee7   :  { %v1477_v62 = vpop.xlane.xlu0 %1476 }
 0xee8   :  { %v1484_v63 = vsub.f32 %v4043_v46, %v1482_v61  ;;  %v1481_v0 = vmul.f32 0.03125, %v1477_v62 }
 0xeea   :  { %v1483_v47 = vsub.f32 %v4046_v41, %v1481_v0  ;;  %v1486_v1 = vmul.f32 %v1484_v63, %v1484_v63 }
 0xeec   :  { %v1490_v49 = vsel %vm165_vm0, %v1486_v1, 0.0  ;;  %v1485_v2 = vmul.f32 %v1483_v47, %v1483_v47 }
 0xeed   :  { %1491 = vadd.xlane.f32.xlu1 %v1490_v49 }
 0xeee   :  { %v1487_v3 = vsel %vm165_vm0, %v1485_v2, 0.0 }
 0xeef   :  { %1488 = vadd.xlane.f32.xlu0 %v1487_v3 }
 0xf76   :  { %v1492_v8 = vpop.xlane.xlu1 %1491 }
 0xf77   :  { %v1494_v9 = vmul.f32 0.03125, %v1492_v8 }
 0xf78   :  { %v1489_v10 = vpop.xlane.xlu0 %1488 }
 0xf79   :  { %v1496_v11 = vadd.f32 1e-05, %v1494_v9  ;;  %v1493_v12 = vmul.f32 0.03125, %v1489_v10 }
 0xf7b   :  { %3535 = vrsqrt.f32 %v1496_v11  ;;  %v1495_v13 = vadd.f32 1e-05, %v1493_v12 }
 0xf7d   :  { %3537 = vrsqrt.f32 %v1495_v13 }
 0xf88   :  { %v3536_v16 = vpop.eup %3535 }
 0xf89   :  { %v1500_v17 = vmul.f32 %v3536_v16, %v1484_v63 }
 0xf8a   :  { %v3538_v18 = vpop.eup %3537 }
 0xf8b   :  { %v1499_v19 = vmul.f32 %v3538_v18, %v1483_v47  ;;  %v1506_v20 = vmul.f32 %v2964_v15, %v1500_v17 }
 0xf8d   :  { %v1505_v23 = vmul.f32 %v2964_v15, %v1499_v19  ;;  %v1512_v26 = vadd.f32 %v2965_v21, %v1506_v20 }
 0xf8f   :  { %v1511_v24 = vadd.f32 %v2965_v21, %v1505_v23 }
 0xf91   :  { %3347 = vmatprep.mubr.msk.f32.mxu1 %vm165_vm0, %v1511_v24 }
 0xf92   :  { %3348 = vmatmul.mubr.msk.f32.vlgmr.msra.gmra.mxu1 %vm165_vm0, %v1512_v26 }
0x1052   :  { %v4076_v27 = vpop.f32.mrf.mxu1 }
0x1053   :  { %1603 = vrot.lane.b32.xlu0 %v4076_v27, %s3605_s25 }
0x1054   :  { %v4080_v28 = vpop.f32.mrf.mxu1 }
0x1055   :  { %1601 = vrot.lane.b32.xlu1 %v4080_v28, %s3605_s25  ;;  %3354 = vmatprep.mubr.msk.f32.mxu1 %vm296_vm1, %v4080_v28 }
0x10c5   :  { %v1604_v29 = vpop.permute.xlu0 %1603 }
0x10c6   :  { %3350 = vmatprep.subr.msk.mxu1 %vm296_vm1, %v1604_v29 }
0x10c7   :  { %3351 = vmatpush3.xpose.msk.msra.mxu1 %vm296_vm1, %v1604_v29  ;;  %v1602_v30 = vpop.permute.xlu1 %1601 }
0x10c8   :  { %3352 = vmatprep.subr.msk.mxu1 %vm296_vm1, %v1602_v30 }
0x10cb   :  { %3353 = vmatpush3.xpose.msk.msra.mxu1 %vm296_vm1, %v1602_v30 }
0x10ce   :  { %3355 = vmatmul.mubr.msk.f32.vlgmr.msra.gmra.mxu1 %vm296_vm1, %v4076_v27 }
0x118e   :  { %v3356_v31 = vpop.f32.mrf.mxu1 }
0x118f   :  { %v1689_v14 = vmul.f32 0.35355338, %v3356_v31 }
0x1190   :  { %v1679_v32 = vpop.f32.mrf.mxu1 }
0x1191   :  { %v1688_v33 = vmul.f32 0.35355338, %v1679_v32  ;;  %v1691_v34 = vadd.f32 %v1689_v14, %v3829_v22 }
0x1193   :  { %v1695_v35 = vsel %vm384_vm13, %v1691_v34, -inf  ;;  %v1690_v36 = vadd.f32 %v1688_v33, %v3831_v25 }
0x1194   :  { %1696 = vmax.xlane.f32.xlu0 %v1695_v35 }
0x1195   :  { %v1692_v37 = vsel %vm384_vm13, %v1690_v36, -inf }
0x1196   :  { %1693 = vmax.xlane.f32.xlu1 %v1692_v37 }
0x11a7   :  { %1714 = vrot.lane.b32.xlu1 %v4080_v28, %s3608_s26 }
0x11aa   :  { %1716 = vrot.lane.b32.xlu0 %v4076_v27, %s3608_s26 }
0x11ab   :  { %1809 = vrot.lane.b32.xlu1 %v4076_v27, %s3609_s27 }
0x11af   :  { %1807 = vrot.lane.b32.xlu1 %v4080_v28, %s3609_s27 }
0x121d   :  { %v1697_v38 = vpop.xlane.xlu0 %1696 }
0x121e   :  { %v1699_v39 = vsub.f32 %v1691_v34, %v1697_v38 }
0x121f   :  { %v1694_v40 = vpop.xlane.xlu1 %1693 }
0x1220   :  { %v1702_v42 = vmul.f32 1.442695, %v1699_v39  ;;  %v1698_v43 = vsub.f32 %v1690_v36, %v1694_v40 }
0x1221   :  { %v1717_v44 = vpop.permute.xlu0 %1716 }
0x1222   :  { %3539 = vpow2.f32 %v1702_v42  ;;  %v1700_v45 = vmul.f32 1.442695, %v1698_v43  ;;  %3357 = vmatprep.subr.mxu1 %v1717_v44 }
0x1223   :  { %3358 = vmatpush3.msra.mxu1 %v1717_v44  ;;  %v1715_v48 = vpop.permute.xlu1 %1714 }
0x1224   :  { %3541 = vpow2.f32 %v1700_v45  ;;  %3359 = vmatprep.subr.mxu1 %v1715_v48 }
0x1225   :  { %3360 = vmatpush3.msra.mxu1 %v1715_v48 }
0x1227   :  { %v1810_v50 = vpop.permute.xlu1 %1809 }
0x1228   :  { %3364 = vmatprep.subr.msk.mxu1 %vm296_vm1, %v1810_v50 }
0x122b   :  { %v1808_v55 = vpop.permute.xlu1 %1807 }
0x122f   :  { %v3540_v51 = vpop.eup %3539 }
0x1230   :  { %v1707_v52 = vsel %vm384_vm13, %v3540_v51, 0.0 }
0x1231   :  { %v3542_v53 = vpop.eup %3541  ;;  %1708 = vadd.xlane.f32.xlu1 %v1707_v52 }
0x1232   :  { %v1704_v54 = vsel %vm384_vm13, %v3542_v53, 0.0 }
0x1233   :  { %1705 = vadd.xlane.f32.xlu0 %v1704_v54 }
0x1242   :  { %1803 = vrot.lane.b32.xlu1 %v4080_v28, %s3610_s28 }
0x1246   :  { %2021 = vrot.lane.b32.xlu1 %v4080_v28, %s3611_s29 }
0x1249   :  { %2023 = vrot.lane.b32.xlu0 %v4076_v27, %s3611_s29 }
0x124a   :  { %2019 = vrot.lane.b32.xlu1 %v4076_v27, %s3612_s30 }
0x124d   :  { %1805 = vrot.lane.b32.xlu0 %v4076_v27, %s3610_s28 }
0x1251   :  { %2017 = vrot.lane.b32.xlu0 %v4080_v28, %s3612_s30 }
0x12ba   :  { %v1709_v56 = vpop.xlane.xlu1 %1708 }
0x12bb   :  { %3543 = vrcp.f32 %v1709_v56 }
0x12bc   :  { %v1706_v57 = vpop.xlane.xlu0 %1705 }
0x12bd   :  { %3545 = vrcp.f32 %v1706_v57 }
0x12be   :  { %v1804_v58 = vpop.permute.xlu1 %1803 }
0x12c0   :  { %v2024_v59 = vpop.permute.xlu0 %2023 }
0x12c1   :  { %3378 = vmatprep.subr.msk.mxu0 %vm296_vm1, %v2024_v59 }
0x12c2   :  { %3379 = vmatpush3.xpose.msk.msra.mxu0 %vm296_vm1, %v2024_v59  ;;  %v2022_v60 = vpop.permute.xlu1 %2021 }
0x12c3   :  { %3380 = vmatprep.subr.msk.mxu0 %vm296_vm1, %v2022_v60 }
0x12c4   :  { %v1806_v61 = vpop.permute.xlu0 %1805 }
0x12c6   :  { %3381 = vmatpush3.xpose.msk.msra.mxu0 %vm296_vm1, %v2022_v60  ;;  %v2020_v0 = vpop.permute.xlu1 %2019 }
0x12c8   :  { %v2018_v62 = vpop.permute.xlu0 %2017  ;;  %v3544_v63 = vpop.eup %3543 }
0x12c9   :  { %3382 = vmatprep.mubr.msk.f32.mxu0 %vm296_vm1, %v2018_v62  ;;  %v1713_v49 = vmul.f32 %v3544_v63, %v3540_v51 }
0x12ca   :  { %v3546_v47 = vpop.eup %3545  ;;  %3383 = vmatmul.mubr.msk.f32.vlgmr.msra.gmra.mxu0 %vm296_vm1, %v2020_v0 }
0x12cb   :  { %v1711_v1 = vmul.f32 %v3546_v47, %v3542_v53 }
0x12cd   :  { %3361 = vmatprep.mubr.msk.f32.mxu1 %vm384_vm13, %v1711_v1 }
0x12ce   :  { %3362 = vmatmul.mubr.msk.f32.vlgmr.msra.gmra.mxu1 %vm384_vm13, %v1713_v49 }
0x12cf   :  { %3365 = vmatpush3.xpose.msk.msra.mxu1 %vm296_vm1, %v1810_v50  ;;  %3368 = vmatprep.mubr.msk.f32.mxu1 %vm296_vm1, %v1804_v58 }
0x12d0   :  { %3366 = vmatprep.subr.msk.mxu1 %vm296_vm1, %v1808_v55 }
0x12d3   :  { %3367 = vmatpush3.xpose.msk.msra.mxu1 %vm296_vm1, %v1808_v55 }
0x12d6   :  { %3369 = vmatmul.mubr.msk.f32.vlgmr.msra.gmra.mxu1 %vm296_vm1, %v1806_v61 }
0x138a   :  { %v3384_v4 = vpop.f32.mrf.mxu0 }
0x138b   :  { %v2109_v16 = vmul.f32 0.35355338, %v3384_v4 }
0x138c   :  { %v2099_v5 = vpop.f32.mrf.mxu0 }
0x138d   :  { %v2108_v9 = vmul.f32 0.35355338, %v2099_v5  ;;  %v2111_v19 = vadd.f32 %v2109_v16, %v3829_v22 }
0x138e   :  { %v3363_v2 = vpop.f32.mrf.mxu1 }
0x138f   :  { %1802 = vst.msk [vmem:[#allocation2 + $0x8] sm:$0xff] %vm296_vm1, %v3363_v2  ;;  %v2110_v17 = vadd.f32 %v2108_v9, %v3831_v25  ;;  %v2115_v20 = vsel %vm384_vm13, %v2111_v19, -inf }
0x1390   :  { %v1792_v3 = vpop.f32.mrf.mxu1 }
0x1391   :  { %1801 = vst.msk [vmem:[#allocation2] sm:$0xff] %vm296_vm1, %v1792_v3  ;;  %v2112_v18 = vsel %vm384_vm13, %v2110_v17, -inf }
0x1396   :  { %v3370_v6 = vpop.f32.mrf.mxu1 }
0x1397   :  { %v1895_v7 = vmul.f32 0.35355338, %v3370_v6 }
0x1398   :  { %v1885_v8 = vpop.f32.mrf.mxu1 }
0x1399   :  { %v1894_v10 = vmul.f32 0.35355338, %v1885_v8  ;;  %v1897_v11 = vadd.f32 %v1895_v7, %v3829_v22 }
0x139b   :  { %v1901_v12 = vsel %vm384_vm13, %v1897_v11, -inf  ;;  %v1896_v13 = vadd.f32 %v1894_v10, %v3831_v25 }
0x139c   :  { %1902 = vmax.xlane.f32.xlu1 %v1901_v12 }
0x139d   :  { %v1898_v15 = vsel %vm384_vm13, %v1896_v13, -inf }
0x139e   :  { %1899 = vmax.xlane.f32.xlu0 %v1898_v15 }
0x13a2   :  { %2113 = vmax.xlane.f32.xlu0 %v2112_v18 }
0x13a6   :  { %2116 = vmax.xlane.f32.xlu0 %v2115_v20 }
0x1425   :  { %v1903_v24 = vpop.xlane.xlu1 %1902 }
0x1426   :  { %v1905_v30 = vsub.f32 %v1897_v11, %v1903_v24 }
0x1427   :  { %v1900_v21 = vpop.xlane.xlu0 %1899 }
0x1428   :  { %v1904_v23 = vsub.f32 %v1896_v13, %v1900_v21  ;;  %v1908_v34 = vmul.f32 1.442695, %v1905_v30 }
0x142a   :  { %v1906_v31 = vmul.f32 1.442695, %v1904_v23 }
0x142b   :  { %v2114_v26 = vpop.xlane.xlu0 %2113 }
0x142c   :  { %v2118_v29 = vsub.f32 %v2110_v17, %v2114_v26 }
0x142e   :  { %v2120_v14 = vmul.f32 1.442695, %v2118_v29 }
0x142f   :  { %v2117_v32 = vpop.xlane.xlu0 %2116 }
0x1430   :  { %3547 = vpow2.f32 %v2120_v14  ;;  %v2119_v33 = vsub.f32 %v2111_v19, %v2117_v32 }
0x1431   :  { %3549 = vpow2.f32 %v1906_v31 }
0x1432   :  { %v2122_v35 = vmul.f32 1.442695, %v2119_v33 }
0x1434   :  { %3551 = vpow2.f32 %v2122_v35 }
0x1435   :  { %3553 = vpow2.f32 %v1908_v34 }
0x143d   :  { %v3548_v36 = vpop.eup %3547 }
0x143e   :  { %v2124_v37 = vsel %vm384_vm13, %v3548_v36, 0.0  ;;  %v3550_v38 = vpop.eup %3549 }
0x143f   :  { %2125 = vadd.xlane.f32.xlu0 %v2124_v37  ;;  %v1910_v40 = vsel %vm384_vm13, %v3550_v38, 0.0  ;;  %v2998_v37 = vld [vmem:[%s4337_s4 + $0x30] sm:$0xff] }
0x1441   :  { %v3552_v39 = vpop.eup %3551 }
0x1442   :  { %v2127_v42 = vsel %vm384_vm13, %v3552_v39, 0.0  ;;  %v3554_v43 = vpop.eup %3553 }
0x1443   :  { %1911 = vadd.xlane.f32.xlu0 %v1910_v40  ;;  %2128 = vadd.xlane.f32.xlu1 %v2127_v42  ;;  %v1913_v44 = vsel %vm384_vm13, %v3554_v43, 0.0 }
0x1447   :  { %1914 = vadd.xlane.f32.xlu1 %v1913_v44 }
0x1458   :  { %1920 = vrot.lane.b32.xlu1 %v4080_v28, %s3613_s9 }
0x1459   :  { %1922 = vrot.lane.b32.xlu0 %v4076_v27, %s3613_s9 }
0x145c   :  { %2136 = vrot.lane.b32.xlu1 %v4076_v27, %s3614_s10 }
0x145d   :  { %2237 = vrot.lane.b32.xlu0 %v4076_v27, %s3615_s1 }
0x1460   :  { %2134 = vrot.lane.b32.xlu1 %v4080_v28, %s3614_s10 }
0x1461   :  { %2231 = vrot.lane.b32.xlu0 %v4080_v28, %s3616_s11 }
0x1464   :  { %2235 = vrot.lane.b32.xlu1 %v4080_v28, %s3615_s1 }
0x1468   :  { %2233 = vrot.lane.b32.xlu1 %v4076_v27, %s3616_s11 }
0x14c8   :  { %v2126_v45 = vpop.xlane.xlu0 %2125 }
0x14cc   :  { %v1912_v48 = vpop.xlane.xlu0 %1911  ;;  %v2129_v50 = vpop.xlane.xlu1 %2128 }
0x14cd   :  { %3555 = vrcp.f32 %v1912_v48 }
0x14ce   :  { %3557 = vrcp.f32 %v2126_v45 }
0x14d0   :  { %v1923_v51 = vpop.permute.xlu0 %1922  ;;  %v1915_v52 = vpop.xlane.xlu1 %1914 }
0x14d1   :  { %3559 = vrcp.f32 %v1915_v52  ;;  %3371 = vmatprep.subr.mxu1 %v1923_v51 }
0x14d2   :  { %3372 = vmatpush3.msra.mxu1 %v1923_v51  ;;  %3561 = vrcp.f32 %v2129_v50  ;;  %v3000_v50 = vld [vmem:[%s4335_s2 + $0x19] ss:$0 sm:$0xff] }
0x14d4   :  { %v1921_v53 = vpop.permute.xlu1 %1920  ;;  %v2238_v59 = vpop.permute.xlu0 %2237 }
0x14d5   :  { %3373 = vmatprep.subr.mxu1 %v1921_v53 }
0x14d6   :  { %3374 = vmatpush3.msra.mxu1 %v1921_v53 }
0x14d8   :  { %v2137_v54 = vpop.permute.xlu1 %2136  ;;  %v2232_v47 = vpop.permute.xlu0 %2231 }
0x14d9   :  { %3385 = vmatprep.subr.mxu1 %v2137_v54 }
0x14da   :  { %v3556_v55 = vpop.eup %3555 }
0x14db   :  { %v1917_v56 = vmul.f32 %v3556_v55, %v3550_v38  ;;  %v3558_v57 = vpop.eup %3557  ;;  %v2997_v38 = vld [vmem:[%s4337_s4 + $0x28] sm:$0xff] }
0x14dc   :  { %v2135_v62 = vpop.permute.xlu1 %2134  ;;  %v2131_v63 = vmul.f32 %v3558_v57, %v3548_v36 }
0x14dd   :  { %3375 = vmatprep.mubr.msk.f32.mxu1 %vm384_vm13, %v1917_v56 }
0x14de   :  { %v3560_v58 = vpop.eup %3559 }
0x14df   :  { %v1919_v60 = vmul.f32 %v3560_v58, %v3554_v43  ;;  %v3562_v61 = vpop.eup %3561 }
0x14e0   :  { %v2133_v0 = vmul.f32 %v3562_v61, %v3552_v39  ;;  %v2236_v1 = vpop.permute.xlu1 %2235  ;;  %v2996_v39 = vld [vmem:[%s4337_s4 + $0x20] sm:$0xff] }
0x14e1   :  { %3376 = vmatmul.mubr.msk.f32.vlgmr.msra.gmra.mxu1 %vm384_vm13, %v1919_v60 }
0x14e2   :  { %3386 = vmatpush3.msra.mxu1 %v2137_v54  ;;  %3389 = vmatprep.mubr.msk.f32.mxu1 %vm384_vm13, %v2131_v63 }
0x14e3   :  { %3387 = vmatprep.subr.mxu1 %v2135_v62 }
0x14e4   :  { %3388 = vmatpush3.msra.mxu1 %v2135_v62  ;;  %v2234_v49 = vpop.permute.xlu1 %2233 }
0x14e5   :  { %3392 = vmatprep.subr.msk.mxu1 %vm296_vm1, %v2238_v59  ;;  %3390 = vmatmul.mubr.msk.f32.vlgmr.msra.gmra.mxu1 %vm384_vm13, %v2133_v0 }
0x14e6   :  { %3393 = vmatpush3.xpose.msk.msra.mxu1 %vm296_vm1, %v2238_v59  ;;  %3396 = vmatprep.mubr.msk.f32.mxu1 %vm296_vm1, %v2232_v47 }
0x14e7   :  { %3394 = vmatprep.subr.msk.mxu1 %vm296_vm1, %v2236_v1 }
0x14ea   :  { %3395 = vmatpush3.xpose.msk.msra.mxu1 %vm296_vm1, %v2236_v1 }
0x14ed   :  { %3397 = vmatmul.mubr.msk.f32.vlgmr.msra.gmra.mxu1 %vm296_vm1, %v2234_v49  ;;  %v3008_v49 = vld [vmem:[%s4338_s5 + $0x40] sm:$0xff]  ;;  %vm2910_vm1 = vcmask 8192  }
0x14ee   :  { %3417 = vmatprep.subr.mxu1 %v3008_v49 }
0x14ef   :  { %3418 = vmatpush3.msra.mxu1 %v3008_v49 }
0x15a1   :  { %v3377_v2 = vpop.f32.mrf.mxu1 }
0x15a3   :  { %v1998_v3 = vpop.f32.mrf.mxu1 }
0x15a5   :  { %v3391_v4 = vpop.f32.mrf.mxu1 }
0x15a7   :  { %v2212_v5 = vpop.f32.mrf.mxu1 }
0x15ad   :  { %v3398_v6 = vpop.f32.mrf.mxu1 }
0x15ae   :  { %v2323_v7 = vmul.f32 0.35355338, %v3398_v6  ;;  %v3027_v6 = vld [vmem:[%s4339_s6 + $0xf0] sm:$0xff] }
0x15af   :  { %v2313_v8 = vpop.f32.mrf.mxu1 }
0x15b0   :  { %v2322_v9 = vmul.f32 0.35355338, %v2313_v8  ;;  %v2325_v10 = vadd.f32 %v2323_v7, %v3829_v22  ;;  %v3026_v7 = vld [vmem:[%s4339_s6 + $0xe8] sm:$0xff] }
0x15b2   :  { %v2329_v11 = vsel %vm384_vm13, %v2325_v10, -inf  ;;  %v2324_v12 = vadd.f32 %v2322_v9, %v3831_v25 }
0x15b3   :  { %2330 = vmax.xlane.f32.xlu1 %v2329_v11 }
0x15b4   :  { %v2326_v13 = vsel %vm384_vm13, %v2324_v12, -inf }
0x15b5   :  { %2327 = vmax.xlane.f32.xlu0 %v2326_v13 }
0x15c4   :  { %2348 = vrot.lane.b32.xlu1 %v4080_v28, %s3617_s12 }
0x15c8   :  { %2009 = vrot.lane.b32.xlu1 %v1998_v3, %s3618_s13  ;;  %v3006_v3 = vld [vmem:[%s4338_s5 + $0x30] sm:$0xff] }
0x15cc   :  { %2011 = vrot.lane.b32.xlu1 %v3377_v2, %s3618_s13  ;;  %v3007_v2 = vld [vmem:[%s4338_s5 + $0x38] sm:$0xff] }
0x15cd   :  { %3419 = vmatprep.subr.mxu1 %v3007_v2 }
0x15ce   :  { %3420 = vmatpush3.msra.mxu1 %v3007_v2 }
0x15cf   :  { %3421 = vmatprep.subr.mxu1 %v3006_v3 }
0x15d0   :  { %2225 = vrot.lane.b32.xlu1 %v3391_v4, %s3619_s0  ;;  %3422 = vmatpush3.msra.mxu1 %v3006_v3  ;;  %v3005_v4 = vld [vmem:[%s4338_s5 + $0x28] sm:$0xff] }
0x15d1   :  { %3423 = vmatprep.subr.mxu1 %v3005_v4 }
0x15d2   :  { %3424 = vmatpush3.msra.mxu1 %v3005_v4 }
0x163c   :  { %v2331_v16 = vpop.xlane.xlu1 %2330 }
0x163d   :  { %v2333_v15 = vsub.f32 %v2325_v10, %v2331_v16 }
0x163e   :  { %v2328_v22 = vpop.xlane.xlu0 %2327 }
0x163f   :  { %v2336_v17 = vmul.f32 1.442695, %v2333_v15  ;;  %v2332_v18 = vsub.f32 %v2324_v12, %v2328_v22  ;;  %v3003_v15 = vld [vmem:[%s4335_s2 + $0x15] ss:$0 sm:$0xff] }
0x1640   :  { %v2349_v19 = vpop.permute.xlu1 %2348 }
0x1641   :  { %3563 = vpow2.f32 %v2336_v17  ;;  %v2334_v25 = vmul.f32 1.442695, %v2332_v18  ;;  %v3004_v17 = vld [vmem:[%s4335_s2 + $0x17] ss:$0 sm:$0xff] }
0x1643   :  { %3565 = vpow2.f32 %v2334_v25 }
0x1644   :  { %v2010_v20 = vpop.permute.xlu1 %2009 }
0x1645   :  { %2015 = vst.msk [vmem:[#allocation2] sm:$0xff] %vm708_vm14, %v2010_v20 }
0x1648   :  { %v2012_v21 = vpop.permute.xlu1 %2011 }
0x1649   :  { %2016 = vst.msk [vmem:[#allocation2 + $0x8] sm:$0xff] %vm708_vm14, %v2012_v21 }
0x164c   :  { %v2226_v28 = vpop.permute.xlu1 %2225 }
0x164d   :  { %2230 = vst.msk [vmem:[#allocation2 + $0x8] sm:$0xff] %vm923_vm15, %v2226_v28 }
0x164e   :  { %v3564_v23 = vpop.eup %3563 }
0x164f   :  { %v2341_v24 = vsel %vm384_vm13, %v3564_v23, 0.0 }
0x1650   :  { %v3566_v26 = vpop.eup %3565  ;;  %2342 = vadd.xlane.f32.xlu0 %v2341_v24  ;;  %v3024_v24 = vld [vmem:[%s4339_s6 + $0xd8] sm:$0xff] }
0x1651   :  { %v2338_v29 = vsel %vm384_vm13, %v3566_v26, 0.0 }
0x1654   :  { %2339 = vadd.xlane.f32.xlu0 %v2338_v29  ;;  %v3022_v29 = vld [vmem:[%s4339_s6 + $0xc8] sm:$0xff] }
0x166a   :  { %2350 = vrot.lane.b32.xlu0 %v4076_v27, %s3617_s12  ;;  %v2999_v27 = vld [vmem:[%s4337_s4 + $0x38] sm:$0xff] }
0x166e   :  { %2223 = vrot.lane.b32.xlu0 %v2212_v5, %s3619_s0  ;;  %v3028_v5 = vld [vmem:[%s4339_s6 + $0xf8] sm:$0xff] }
0x16d9   :  { %v2343_v30 = vpop.xlane.xlu0 %2342 }
0x16da   :  { %3567 = vrcp.f32 %v2343_v30  ;;  %v3021_v30 = vld [vmem:[%s4339_s6 + $0xc0] sm:$0xff] }
0x16dd   :  { %v2340_v31 = vpop.xlane.xlu0 %2339 }
0x16de   :  { %3569 = vrcp.f32 %v2340_v31  ;;  %v3020_v31 = vld [vmem:[%s4339_s6 + $0xb8] sm:$0xff] }
0x16e1   :  { %v2351_v14 = vpop.permute.xlu0 %2350 }
0x16e2   :  { %3399 = vmatprep.subr.mxu0 %v2351_v14 }
0x16e3   :  { %3400 = vmatpush3.msra.mxu0 %v2351_v14  ;;  %v3019_v14 = vld [vmem:[%s4339_s6 + $0xb0] sm:$0xff] }
0x16e4   :  { %3401 = vmatprep.subr.mxu0 %v2349_v19 }
0x16e5   :  { %3402 = vmatpush3.msra.mxu0 %v2349_v19  ;;  %v2224_v32 = vpop.permute.xlu0 %2223 }
0x16e6   :  { %2229 = vst.msk [vmem:[#allocation2] sm:$0xff] %vm923_vm15, %v2224_v32  ;;  %3406 = vmatprep.subr.mxu0 %v2999_v27  ;;  %v3018_v32 = vld [vmem:[%s4339_s6 + $0xa8] sm:$0xff] }
0x16e7   :  { %v3568_v33 = vpop.eup %3567 }
0x16e8   :  { %v2347_v36 = vmul.f32 %v3568_v33, %v3564_v23  ;;  %v3025_v23 = vld [vmem:[%s4339_s6 + $0xe0] sm:$0xff] }
0x16e9   :  { %v3017_v33 = vld [vmem:[%s4339_s6 + $0xa0] sm:$0xff] }
0x16eb   :  { %v3570_v34 = vpop.eup %3569 }
0x16ec   :  { %v2345_v35 = vmul.f32 %v3570_v34, %v3566_v26  ;;  %v3023_v26 = vld [vmem:[%s4339_s6 + $0xd0] sm:$0xff]  ;;  %v3016_v34 = vld [vmem:[%s4339_s6 + $0x98] sm:$0xff] }
0x16ee   :  { %3403 = vmatprep.mubr.msk.f32.mxu0 %vm384_vm13, %v2345_v35  ;;  %v3015_v35 = vld [vmem:[%s4339_s6 + $0x90] sm:$0xff] }
0x16ef   :  { %3404 = vmatmul.mubr.msk.f32.vlgmr.msra.gmra.mxu0 %vm384_vm13, %v2347_v36  ;;  %v3014_v36 = vld [vmem:[%s4339_s6 + $0x88] sm:$0xff] }
0x16f0   :  { %3407 = vmatpush3.msra.mxu0 %v2999_v27  ;;  %v3013_v27 = vld [vmem:[%s4339_s6 + $0x80] sm:$0xff] }
0x16f1   :  { %3408 = vmatprep.subr.mxu0 %v2998_v37 }
0x16f2   :  { %3409 = vmatpush3.msra.mxu0 %v2998_v37  ;;  %v3010_v37 = vld [vmem:[%s4338_s5 + $0x48] ss:$0 sm:$0xff] }
0x16f3   :  { %3410 = vmatprep.subr.mxu0 %v2997_v38 }
0x16f4   :  { %3411 = vmatpush3.msra.mxu0 %v2997_v38 }
0x16f5   :  { %3412 = vmatprep.subr.mxu0 %v2996_v39 }
0x16f6   :  { %3413 = vmatpush3.msra.mxu0 %v2996_v39 }
0x16f7   :  { %3428 = vmatprep.subr.mxu0 %v3028_v5 }
0x17af   :  { %v3405_v40 = vpop.f32.mrf.mxu0 }
0x17b0   :  { %2439 = vrot.lane.b32.xlu1 %v3405_v40, %s3620_s22 }
0x17b1   :  { %v2426_v42 = vpop.f32.mrf.mxu0 }
0x17b2   :  { %2437 = vrot.lane.b32.xlu0 %v2426_v42, %s3620_s22 }
0x1822   :  { %v2440_v43 = vpop.permute.xlu1 %2439 }
0x1823   :  { %2444 = vst.msk [vmem:[#allocation2 + $0x8] sm:$0xff] %vm1138_vm2, %v2440_v43 }
0x1824   :  { %v2438_v44 = vpop.permute.xlu0 %2437 }
0x1825   :  { %2443 = vst.msk [vmem:[#allocation2] sm:$0xff] %vm1138_vm2, %v2438_v44 }
0x182a   :  { %v2447_v48 = vld [vmem:[#allocation2 + $0x8] sm:$0xff] }
0x182c   :  { %v2446_v45 = vld [vmem:[#allocation2] sm:$0xff] }
0x182d   :  { %3414 = vmatprep.mubr.msk.f32.mxu0 %vm165_vm0, %v2446_v45 }
0x182e   :  { %3415 = vmatmul.mubr.msk.f32.vlgmr.msra.gmra.mxu0 %vm165_vm0, %v2447_v48 }
0x182f   :  { %3429 = vmatpush3.msra.mxu0 %v3028_v5 }
0x1830   :  { %3430 = vmatprep.subr.mxu0 %v3027_v6 }
0x1831   :  { %3431 = vmatpush3.msra.mxu0 %v3027_v6 }
0x1832   :  { %3432 = vmatprep.subr.mxu0 %v3026_v7 }
0x1833   :  { %3433 = vmatpush3.msra.mxu0 %v3026_v7 }
0x1834   :  { %3434 = vmatprep.subr.mxu0 %v3025_v23 }
0x1835   :  { %3435 = vmatpush3.msra.mxu0 %v3025_v23 }
0x1836   :  { %3436 = vmatprep.subr.mxu0 %v3024_v24 }
0x1837   :  { %3437 = vmatpush3.msra.mxu0 %v3024_v24 }
0x1838   :  { %3438 = vmatprep.subr.mxu0 %v3023_v26 }
0x1839   :  { %3439 = vmatpush3.msra.mxu0 %v3023_v26 }
0x183a   :  { %3440 = vmatprep.subr.mxu0 %v3022_v29 }
0x183b   :  { %3441 = vmatpush3.msra.mxu0 %v3022_v29  ;;  %v3032_v29 = vld [vmem:[%s4340_s7 + $0x20] ss:$0 sm:$0xff] }
0x183c   :  { %3442 = vmatprep.subr.mxu0 %v3021_v30 }
0x183d   :  { %3443 = vmatpush3.msra.mxu0 %v3021_v30 }
0x183e   :  { %3444 = vmatprep.subr.mxu0 %v3020_v31 }
0x183f   :  { %3445 = vmatpush3.msra.mxu0 %v3020_v31 }
0x1840   :  { %3446 = vmatprep.subr.mxu0 %v3019_v14 }
0x1841   :  { %3447 = vmatpush3.msra.mxu0 %v3019_v14 }
0x1842   :  { %3448 = vmatprep.subr.mxu0 %v3018_v32 }
0x1843   :  { %3449 = vmatpush3.msra.mxu0 %v3018_v32 }
0x1844   :  { %3450 = vmatprep.subr.mxu0 %v3017_v33 }
0x1845   :  { %3451 = vmatpush3.msra.mxu0 %v3017_v33 }
0x1846   :  { %3452 = vmatprep.subr.mxu0 %v3016_v34 }
0x1847   :  { %3453 = vmatpush3.msra.mxu0 %v3016_v34 }
0x1848   :  { %3454 = vmatprep.subr.mxu0 %v3015_v35 }
0x1849   :  { %3455 = vmatpush3.msra.mxu0 %v3015_v35 }
0x184a   :  { %3456 = vmatprep.subr.mxu0 %v3014_v36 }
0x184b   :  { %3457 = vmatpush3.msra.mxu0 %v3014_v36 }
0x184c   :  { %3458 = vmatprep.subr.mxu0 %v3013_v27 }
0x184d   :  { %3459 = vmatpush3.msra.mxu0 %v3013_v27 }
0x18ee   :  { %v3416_v51 = vpop.f32.mrf.mxu0 }
0x18ef   :  { %v2535_v52 = vadd.f32 %v3416_v51, %v3000_v50 }
0x18f0   :  { %v2529_v53 = vpop.f32.mrf.mxu0 }
0x18f1   :  { %v4214_v54 = vadd.f32 %v2535_v52, %v4043_v46  ;;  %v2530_v55 = vadd.f32 %v3000_v50, %v2529_v53 }
0x18f3   :  { %v4217_v56 = vadd.f32 %v2530_v55, %v4046_v41  ;;  %v2545_v57 = vsel %vm165_vm0, %v4214_v54, 0.0 }
0x18f4   :  { %2546 = vadd.xlane.f32.xlu1 %v2545_v57 }
0x18f5   :  { %v2542_v58 = vsel %vm165_vm0, %v4217_v56, 0.0 }
0x18f6   :  { %2543 = vadd.xlane.f32.xlu0 %v2542_v58  ;;  %v3029_v58 = vld [vmem:[%s4335_s2 + $0x1b] ss:$0 sm:$0xff] }
0x197d   :  { %v2547_v59 = vpop.xlane.xlu1 %2546 }
0x197e   :  { %v2549_v60 = vmul.f32 0.03125, %v2547_v59 }
0x197f   :  { %v2544_v61 = vpop.xlane.xlu0 %2543 }
0x1980   :  { %v2548_v62 = vmul.f32 0.03125, %v2544_v61  ;;  %v2551_v63 = vsub.f32 %v4214_v54, %v2549_v60 }
0x1982   :  { %v2550_v46 = vsub.f32 %v4217_v56, %v2548_v62  ;;  %v2553_v47 = vmul.f32 %v2551_v63, %v2551_v63 }
0x1984   :  { %v2552_v0 = vmul.f32 %v2550_v46, %v2550_v46  ;;  %v2557_v1 = vsel %vm165_vm0, %v2553_v47, 0.0 }
0x1986   :  { %v2554_v41 = vsel %vm165_vm0, %v2552_v0, 0.0 }
0x1987   :  { %2555 = vadd.xlane.f32.xlu0 %v2554_v41 }
0x198b   :  { %2558 = vadd.xlane.f32.xlu0 %v2557_v1 }
0x1a10   :  { %v2556_v8 = vpop.xlane.xlu0 %2555 }
0x1a11   :  { %v2560_v9 = vmul.f32 0.03125, %v2556_v8  ;;  %v2822_v8 = vld [vmem:[%s4340_s7 + $0x10] sm:$0xff] }
0x1a13   :  { %v2562_v10 = vadd.f32 1e-05, %v2560_v9  ;;  %v2821_v9 = vld [vmem:[%s4340_s7 + $0x8] sm:$0xff] }
0x1a14   :  { %v2559_v11 = vpop.xlane.xlu0 %2558 }
0x1a15   :  { %3571 = vrsqrt.f32 %v2562_v10  ;;  %v2561_v12 = vmul.f32 0.03125, %v2559_v11  ;;  %v2820_v10 = vld [vmem:[%s4340_s7] sm:$0xff] }
0x1a17   :  { %v2563_v13 = vadd.f32 1e-05, %v2561_v12 }
0x1a19   :  { %3573 = vrsqrt.f32 %v2563_v13 }
0x1a22   :  { %v3572_v16 = vpop.eup %3571 }
0x1a23   :  { %v2566_v22 = vmul.f32 %v3572_v16, %v2550_v46 }
0x1a25   :  { %v2572_v18 = vmul.f32 %v3003_v15, %v2566_v22 }
0x1a26   :  { %v3574_v19 = vpop.eup %3573 }
0x1a27   :  { %v2567_v25 = vmul.f32 %v3574_v19, %v2551_v63  ;;  %v2578_v20 = vadd.f32 %v3004_v17, %v2572_v18  ;;  %v3030_v18 = vld [vmem:[%s4335_s2 + $0x1c] ss:$0 sm:$0xff] }
0x1a29   :  { %v2573_v21 = vmul.f32 %v3003_v15, %v2567_v25  ;;  %3425 = vmatprep.mubr.msk.f32.mxu1 %vm165_vm0, %v2578_v20 }
0x1a2b   :  { %v2579_v28 = vadd.f32 %v3004_v17, %v2573_v21 }
0x1a2d   :  { %3426 = vmatmul.mubr.msk.f32.vlgmr.msra.gmra.mxu1 %vm165_vm0, %v2579_v28  ;;  %v3031_v28 = vld [vmem:[%s4335_s2 + $0x1d] ss:$0 sm:$0xff]  ;;  %s3583_s2 = scalar_lea.vmem %s2920_s17, 32 }
0x1a2e   :  { %p3584_p0 = scmp.ne.s32.totalorder %s2920_s17, %s3583_s2  ;;  %p3589_p2 = scmp.lt.s32.totalorder %s3583_s2, %s3583_s2 }
0x1a30   :  { %p3590_p3 = por %p3589_p2, %p3588_p1 }
0x1a32   :  { %p3591_p4 = pnand %p3590_p3, %p3584_p0 }
0x1aed   :  { %v3427_v38 = vpop.f32.mrf.mxu1 }
0x1aee   :  { %v2668_v39 = vadd.f32 %v3427_v38, %v3010_v37 }
0x1aef   :  { %v2662_v40 = vpop.f32.mrf.mxu1 }
0x1af0   :  { %v2674_v42 = vmul.f32 0.70710677, %v2668_v39  ;;  %v2663_v43 = vadd.f32 %v3010_v37, %v2662_v40  ;;  %v2672_v53 = vmul.f32 0.5, %v2668_v39 }
0x1af2   :  { %3575 = verf.f32 %v2674_v42  ;;  %v2673_v44 = vmul.f32 0.70710677, %v2663_v43  ;;  %v2671_v51 = vmul.f32 0.5, %v2663_v43 }
0x1af4   :  { %3577 = verf.f32 %v2673_v44 }
0x1aff   :  { %v3576_v45 = vpop.eup %3575 }
0x1b00   :  { %v2678_v50 = vadd.f32 1.0, %v3576_v45 }
0x1b01   :  { %v3578_v48 = vpop.eup %3577 }
0x1b02   :  { %v2677_v52 = vadd.f32 1.0, %v3578_v48  ;;  %v2680_v57 = vmul.f32 %v2678_v50, %v2672_v53 }
0x1b04   :  { %v2679_v55 = vmul.f32 %v2677_v52, %v2671_v51 }
0x1b06   :  { %3460 = vmatprep.mubr.f32.mxu0 %v2679_v55 }
0x1b07   :  { %3461 = vmatmul.mubr.f32.vlgmr.msra.gmra.mxu0 %v2680_v57 }
0x1bc7   :  { %v3462_v59 = vpop.f32.mrf.mxu0 }
0x1bc8   :  { %v2775_v60 = vadd.f32 %v3462_v59, %v3029_v58 }
0x1bc9   :  { %v2769_v61 = vpop.f32.mrf.mxu0 }
0x1bca   :  { %v2779_v62 = vadd.f32 %v2775_v60, %v4214_v54  ;;  %v2770_v63 = vadd.f32 %v3029_v58, %v2769_v61 }
0x1bcc   :  { %v2778_v46 = vadd.f32 %v2770_v63, %v4217_v56  ;;  %v2785_v0 = vsel %vm165_vm0, %v2779_v62, 0.0  ;;  %v2823_v56 = vld [vmem:[%s4340_s7 + $0x18] sm:$0xff] }
0x1bcd   :  { %2786 = vadd.xlane.f32.xlu1 %v2785_v0  ;;  %3463 = vmatprep.subr.mxu1 %v2823_v56 }
0x1bce   :  { %v2782_v41 = vsel %vm165_vm0, %v2778_v46, 0.0  ;;  %3464 = vmatpush3.msra.mxu1 %v2823_v56 }
0x1bcf   :  { %2783 = vadd.xlane.f32.xlu0 %v2782_v41  ;;  %3465 = vmatprep.subr.mxu1 %v2822_v8 }
0x1bd0   :  { %3466 = vmatpush3.msra.mxu1 %v2822_v8 }
0x1bd1   :  { %3467 = vmatprep.subr.mxu1 %v2821_v9 }
0x1bd2   :  { %3468 = vmatpush3.msra.mxu1 %v2821_v9 }
0x1bd3   :  { %3469 = vmatprep.subr.mxu1 %v2820_v10 }
0x1bd4   :  { %3470 = vmatpush3.msra.mxu1 %v2820_v10 }
0x1c56   :  { %v2787_v47 = vpop.xlane.xlu1 %2786 }
0x1c57   :  { %v2789_v1 = vmul.f32 0.03125, %v2787_v47 }
0x1c58   :  { %v2784_v49 = vpop.xlane.xlu0 %2783 }
0x1c59   :  { %v2791_v2 = vsub.f32 %v2779_v62, %v2789_v1  ;;  %v2788_v3 = vmul.f32 0.03125, %v2784_v49 }
0x1c5b   :  { %v2790_v4 = vsub.f32 %v2778_v46, %v2788_v3  ;;  %v2793_v5 = vmul.f32 %v2791_v2, %v2791_v2 }
0x1c5d   :  { %v2797_v6 = vsel %vm165_vm0, %v2793_v5, 0.0  ;;  %v2792_v7 = vmul.f32 %v2790_v4, %v2790_v4 }
0x1c5e   :  { %2798 = vadd.xlane.f32.xlu1 %v2797_v6 }
0x1c5f   :  { %v2794_v54 = vsel %vm165_vm0, %v2792_v7, 0.0 }
0x1c60   :  { %2795 = vadd.xlane.f32.xlu0 %v2794_v54 }
0x1ce7   :  { %v2799_v11 = vpop.xlane.xlu1 %2798 }
0x1ce8   :  { %v2801_v12 = vmul.f32 0.03125, %v2799_v11 }
0x1ce9   :  { %v2796_v13 = vpop.xlane.xlu0 %2795 }
0x1cea   :  { %v2803_v16 = vadd.f32 1e-05, %v2801_v12  ;;  %v2800_v15 = vmul.f32 0.03125, %v2796_v13 }
0x1cec   :  { %3579 = vrsqrt.f32 %v2803_v16  ;;  %v2802_v22 = vadd.f32 1e-05, %v2800_v15 }
0x1cee   :  { %3581 = vrsqrt.f32 %v2802_v22 }
0x1cf9   :  { %v3580_v17 = vpop.eup %3579 }
0x1cfa   :  { %v2807_v19 = vmul.f32 %v3580_v17, %v2791_v2 }
0x1cfb   :  { %v3582_v25 = vpop.eup %3581 }
0x1cfc   :  { %v2806_v20 = vmul.f32 %v3582_v25, %v2790_v4  ;;  %v2813_v21 = vmul.f32 %v3030_v18, %v2807_v19 }
0x1cfe   :  { %v2812_v23 = vmul.f32 %v3030_v18, %v2806_v20  ;;  %v2819_v26 = vadd.f32 %v3031_v28, %v2813_v21 }
0x1d00   :  { %v2818_v24 = vadd.f32 %v3031_v28, %v2812_v23 }
0x1d02   :  { %3471 = vmatprep.mubr.msk.f32.mxu1 %vm165_vm0, %v2818_v24 }
0x1d03   :  { %3472 = vmatmul.mubr.msk.f32.vlgmr.msra.gmra.mxu1 %vm165_vm0, %v2819_v26 }
0x1dc3   :  { %v3473_v30 = vpop.f32.mrf.mxu1 }
0x1dc4   :  { %v2907_v31 = vadd.f32 %v3473_v30, %v3032_v29 }
0x1dc5   :  { %v2901_v14 = vpop.f32.mrf.mxu1 }
0x1dc6   :  { %2912 = vst.msk [vmem:[#allocation3 + $0x1] sm:$0x1] %vm2910_vm1, %v2907_v31  ;;  %v2902_v32 = vadd.f32 %v3032_v29, %v2901_v14 }
0x1dc8   :  { %2911 = vst.msk [vmem:[#allocation3] sm:$0x1] %vm2910_vm1, %v2902_v32 }
0x1dc9   :  { %3594 = shalt.err (!%p3591_p4)
}
0x1dca   :  { %2922 = dma.vmem_to_hbm [thread:$0]  %s2920_s17, 32, %s4341_s8, [#allocation4]  }
0x1dcb   :  { %3603 = dma.done.wait [#allocation4], 32  }
0x1dcc   :  { %3604 = vsyncadd [#allocation4], 4294967264 }
0x1dcd   :  { %2926 = vsyncpa [#allocation4], 1 }

</bundles_post_ra>
